<compile_context>
chip_gen: v7x
topology: tpu7x:2x2x1
jax: 0.10.0
libtpu: 0.0.40
codegen_flags: <defaults>
</compile_context>

<pallas_src>
import jax
import jax.numpy as jnp
from jax.experimental import pallas as pl
from jax.experimental.pallas import tpu as pltpu

MIB = 1024 * 1024


# ------------------------------- helpers ------------------------------------


def _round_up(x, m):
    return ((x + m - 1) // m) * m


def _pick_block(dim_pad, candidates=(512, 256, 128)):
    for b in candidates:
        if dim_pad % b == 0:
            return b
    return 128


def _pick_bm(n_pad):
    # Keep >= 2 row tiles whenever possible so both v7x TensorCores get work.
    cap = n_pad // 2 if n_pad >= 256 else n_pad
    for b in (512, 256, 128):
        if b <= cap and n_pad % b == 0:
            return b
    return 128


def _vmem_limit(footprint_bytes):
    # Double-buffered footprint + generous headroom, capped well below v7x's
    # 64 MiB physical VMEM.
    return int(min(max(2 * footprint_bytes, 16 * MIB), 40 * MIB))


def _pad2(x, rows, cols):
    return jnp.pad(x, ((0, rows - x.shape[0]), (0, cols - x.shape[1])))


# ----------------------------- Pallas kernels --------------------------------


def gcn_prep_kernel(a_ref, adj_ref, dinv_ref, deg_acc):
    """Emit adj_t = fill_diag(binarize(A)^T, 1) (int8) and dinv = rsqrt(deg).

    Input tile is the already-binarized A[j_block, i_block] (int8).  The tile
    is transposed ONCE here (XLU, amortized) so every layer's aggregation is a
    plain non-transposed MXU matmul.  deg[i] = rowsum(adj_t)[i] is accumulated
    over the j (source) grid axis in an f32 scratch.
    """
    i = pl.program_id(0)          # target-node tile (adj_t rows)
    j = pl.program_id(1)          # source-node tile (adj_t cols) -- reduction

    @pl.when(j == 0)
    def _():
        deg_acc[...] = jnp.zeros_like(deg_acc)

    a = a_ref[...]                                   # (bs, bt) int8, values 0/1
    bs, bt = a.shape
    src = jax.lax.broadcasted_iota(jnp.int32, (bs, bt), 0) + j * bs
    tgt = jax.lax.broadcasted_iota(jnp.int32, (bs, bt), 1) + i * bt
    # fill_diag semantics: the diagonal is SET to 1 (not added).
    a_loop = jnp.where(src == tgt, 1.0, a.astype(jnp.float32))
    # One-time transpose; values stay exactly 0/1 so int8 storage is lossless.
    adj_ref[...] = a_loop.T.astype(adj_ref.dtype)
    deg_acc[...] += jnp.sum(a_loop, axis=0, keepdims=True)      # (1, bt)

    @pl.when(j == pl.num_programs(1) - 1)
    def _():
        # deg >= 1 after self-loops (padded nodes included), no zero guard.
        dinv_ref[...] = jax.lax.rsqrt(deg_acc[...])


def gcn_xw_kernel(x_ref, w_ref, dinv_ref, y_ref, acc_ref):
    """Hoisted per-layer projection: Y = dinv_src * (X @ W), bf16 output."""
    k = pl.program_id(2)

    @pl.when(k == 0)
    def _():
        acc_ref[...] = jnp.zeros_like(acc_ref)

    acc_ref[...] += jnp.dot(x_ref[...], w_ref[...],
                            preferred_element_type=jnp.float32)

    @pl.when(k == pl.num_programs(2) - 1)
    def _():
        y_ref[...] = (dinv_ref[...] * acc_ref[...]).astype(y_ref.dtype)


def gcn_agg_kernel(adj_ref, y_ref, dinv_ref, b_ref, o_ref, acc_ref):
    """Aggregation: out = ReLU(dinv_tgt * (adj_t @ Y) + b), tiled (i, j, k)."""
    k = pl.program_id(2)

    @pl.when(k == 0)
    def _():
        acc_ref[...] = jnp.zeros_like(acc_ref)

    # int8 (0/1) adjacency streamed from HBM, cast to bf16 on the VPU just
    # before the MXU dot -> halves the dominant HBM stream.
    a = adj_ref[...].astype(jnp.bfloat16)
    acc_ref[...] += jnp.dot(a, y_ref[...], preferred_element_type=jnp.float32)

    @pl.when(k == pl.num_programs(2) - 1)
    def _():
        out = dinv_ref[...] * acc_ref[...] + b_ref[...]
        o_ref[...] = jnp.maximum(out, 0.0).astype(o_ref.dtype)


# ------------------------------ JAX wrappers ----------------------------------


def gcn_prep(a_bin_pad, *, block):
    """Returns (adj_t int8 (N,N), dinv_row f32 (1,N))."""
    n_pad = a_bin_pad.shape[0]
    nt = n_pad // block
    # Double-buffered blocks + in-kernel f32/int32 temporaries (iotas, a_loop,
    # transpose result).
    footprint = (2 * (block * block * 1 + block * block * 1 + 8 * block * 4)
                 + 8 * block * 4 + 6 * block * block * 4)
    return pl.pallas_call(
        gcn_prep_kernel,
        out_shape=(jax.ShapeDtypeStruct((n_pad, n_pad), jnp.int8),
                   jax.ShapeDtypeStruct((1, n_pad), jnp.float32)),
        grid_spec=pltpu.PrefetchScalarGridSpec(
            num_scalar_prefetch=0,
            grid=(nt, nt),
            in_specs=[pl.BlockSpec((block, block), lambda i, j: (j, i))],
            out_specs=(pl.BlockSpec((block, block), lambda i, j: (i, j)),
                       pl.BlockSpec((1, block), lambda i, j: (0, i))),
            scratch_shapes=[pltpu.VMEM((1, block), jnp.float32)],
        ),
        compiler_params=pltpu.CompilerParams(
            dimension_semantics=("parallel", "arbitrary"),
            vmem_limit_bytes=_vmem_limit(footprint),
        ),
    )(a_bin_pad)


def gcn_xw(x, w, dinv, *, bm, bn):
    """Y = dinv * (X @ W), bf16, tiled (rows, cols, F-reduction)."""
    n_pad, f_pad = x.shape
    h_pad = w.shape[1]
    bk = _pick_block(f_pad)
    footprint = (2 * (bm * bk * 2 + bk * bn * 2 + bm * bn * 2 + bm * 128 * 4)
                 + bm * bn * 4)
    cost = pl.CostEstimate(
        flops=2 * n_pad * f_pad * h_pad,
        transcendentals=0,
        bytes_accessed=n_pad * f_pad * 2 + f_pad * h_pad * 2 + n_pad * h_pad * 2)
    return pl.pallas_call(
        gcn_xw_kernel,
        out_shape=jax.ShapeDtypeStruct((n_pad, h_pad), jnp.bfloat16),
        grid_spec=pltpu.PrefetchScalarGridSpec(
            num_scalar_prefetch=0,
            grid=(n_pad // bm, h_pad // bn, f_pad // bk),
            in_specs=[
                pl.BlockSpec((bm, bk), lambda i, j, k: (i, k)),   # X
                pl.BlockSpec((bk, bn), lambda i, j, k: (k, j)),   # W
                pl.BlockSpec((bm, 1), lambda i, j, k: (i, 0)),    # dinv (src)
            ],
            out_specs=pl.BlockSpec((bm, bn), lambda i, j, k: (i, j)),
            scratch_shapes=[pltpu.VMEM((bm, bn), jnp.float32)],
        ),
        compiler_params=pltpu.CompilerParams(
            dimension_semantics=("parallel", "parallel", "arbitrary"),
            vmem_limit_bytes=_vmem_limit(footprint),
        ),
        cost_estimate=cost,
    )(x, w, dinv)


def gcn_agg(adj_t, y, dinv, b, *, bm, bn, bk, out_dtype):
    """out = ReLU(dinv * (adj_t @ Y) + b), adjacency streamed as int8."""
    n_pad = adj_t.shape[0]
    h_pad = y.shape[1]
    out_bytes = jnp.dtype(out_dtype).itemsize
    footprint = (2 * bm * bk * 1 + 2 * bk * bn * 2 + 2 * bm * bn * out_bytes
                 + bm * bn * 4 + 2 * bm * 128 * 4 + 2 * 8 * bn * 4)
    cost = pl.CostEstimate(
        flops=2 * n_pad * n_pad * h_pad,
        transcendentals=0,
        bytes_accessed=(n_pad * n_pad * 1 * (h_pad // bn)     # adj, per j pass
                        + (n_pad // bm) * n_pad * h_pad * 2   # Y re-streamed per i
                        + n_pad * h_pad * out_bytes))
    return pl.pallas_call(
        gcn_agg_kernel,
        out_shape=jax.ShapeDtypeStruct((n_pad, h_pad), out_dtype),
        grid_spec=pltpu.PrefetchScalarGridSpec(
            num_scalar_prefetch=0,
            grid=(n_pad // bm, h_pad // bn, n_pad // bk),
            in_specs=[
                pl.BlockSpec((bm, bk), lambda i, j, k: (i, k)),   # adj_t (int8)
                pl.BlockSpec((bk, bn), lambda i, j, k: (k, j)),   # Y (bf16)
                pl.BlockSpec((bm, 1), lambda i, j, k: (i, 0)),    # dinv (target)
                pl.BlockSpec((1, bn), lambda i, j, k: (0, j)),    # bias
            ],
            out_specs=pl.BlockSpec((bm, bn), lambda i, j, k: (i, j)),
            scratch_shapes=[pltpu.VMEM((bm, bn), jnp.float32)],
        ),
        compiler_params=pltpu.CompilerParams(
            dimension_semantics=("parallel", "parallel", "arbitrary"),
            vmem_limit_bytes=_vmem_limit(footprint),
        ),
        cost_estimate=cost,
    )(adj_t, y, dinv, b)


def init_params(key, num_features, num_hidden, num_layers):
    """Deterministic glorot-uniform weights, zero bias (GCNConv defaults)."""
    params = []
    fan_in = num_features
    for _ in range(num_layers):
        key, sub = jax.random.split(key)
        limit = (6.0 / (fan_in + num_hidden)) ** 0.5
        w = jax.random.uniform(
            sub, (fan_in, num_hidden), jnp.float32, minval=-limit, maxval=limit)
        b = jnp.zeros((1, num_hidden), jnp.float32)
        params.append((w, b))
        fan_in = num_hidden
    return params


def vanilla_gcn_feature_embedding(features, A, params, dropout=0.0):
    """Forward pass of VanillaGCNFeatureEmbedding. Returns (h, None)."""
    n, f = features.shape
    h_dim = params[0][0].shape[1]
    n_pad = _round_up(n, 128)
    f_pad = _round_up(f, 128)
    h_pad = _round_up(h_dim, 128)

    bm = _pick_bm(n_pad)
    bk = _pick_block(n_pad, (1024, 512, 256, 128))
    bn = _pick_block(h_pad, (512, 256, 128))
    prep_block = _pick_block(n_pad, (512, 256, 128))

    # Binarize + cast to int8 BEFORE padding so prep only streams 1 byte/entry.
    a_bin_pad = _pad2((A != 0).astype(jnp.int8), n_pad, n_pad)
    adj_t, dinv_row = gcn_prep(a_bin_pad, block=prep_block)
    dinv = dinv_row.reshape(n_pad, 1)

    # Padded nodes get only a self-loop (deg 1) and therefore produce ReLU(b)
    # activations; their adjacency columns into real nodes are all zero, so
    # they never contaminate real rows, and they are sliced off at the end.
    h = _pad2(features.astype(jnp.float32), n_pad, f_pad).astype(jnp.bfloat16)
    out = None
    for li, (w, b) in enumerate(params):
        in_pad = h.shape[1]
        w_p = _pad2(w.astype(jnp.float32), in_pad, h_pad).astype(jnp.bfloat16)
        b_p = _pad2(b.astype(jnp.float32), 1, h_pad)
        # Hoisted per-layer projection (computed once, not per output-row tile).
        y = gcn_xw(h, w_p, dinv, bm=bm, bn=bn)
        last = li == len(params) - 1
        out = gcn_agg(adj_t, y, dinv, b_p, bm=bm, bn=bn, bk=bk,
                      out_dtype=jnp.float32 if last else jnp.bfloat16)
        # dropout(p=0.0) is the identity; nothing to do.
        # TODO(synk): non-zero dropout would need pltpu.prng_random_bits masking.
        h = out
    return out[:n, :h_dim], None


# --------------------------- pure-JAX reference -------------------------------


def reference_forward(features, A, params):
    n = A.shape[0]
    eye = jnp.eye(n, dtype=jnp.float32)
    adj_t = (A != 0).astype(jnp.float32).T
    adj_t = adj_t * (1.0 - eye) + eye                 # fill_diag(adj_t, 1)
    deg = adj_t.sum(axis=1, keepdims=True)
    dinv = jax.lax.rsqrt(deg)
    ahat = dinv * adj_t * dinv.T
    h = features
    for (w, b) in params:
        h = jnp.maximum(ahat @ (h @ w) + b, 0.0)
    return h


# ---------------------------------- main ---------------------------------------

if __name__ == "__main__":
    N = 300         # number of graph nodes (pads to 384 -> multi-tile grids)
    F = 8           # num_features
    H = 32          # num_hidden
    L = 2           # num_layers

    key = jax.random.PRNGKey(0)
    k_feat, k_adj, k_par = jax.random.split(key, 3)

    features = jax.random.normal(k_feat, (N, F), jnp.float32)
    # Dense adjacency with ~30% edges (values are nonzero indicators).
    A = (jax.random.uniform(k_adj, (N, N)) < 0.3).astype(jnp.float32)

    params = init_params(k_par, F, H, L)

    fwd = jax.jit(vanilla_gcn_feature_embedding)
    h, _ = fwd(features, A, params)
    h = jax.block_until_ready(h)

    h_ref = reference_forward(features, A, params)

    assert h.shape == (N, H)
    assert bool(jnp.all(h >= 0.0))                    # ReLU output
    assert bool(jnp.all(jnp.isfinite(h)))
    # bf16 intermediates (Y and intermediate activations) round vs the f32
    # reference; tolerance documented at 5e-2 for this 2-layer stack.
    assert bool(jnp.allclose(h, h_ref, rtol=5e-2, atol=5e-2)), (
        "max abs err %.4g" % float(jnp.max(jnp.abs(h - h_ref))))

    print("KERNEL_OK")
</pallas_src>

<mosaic_0001>
module attributes {stable_mosaic.version = 11 : i64} {
  func.func @gcn_agg_kernel(%arg0: i32, %arg1: i32, %arg2: i32, %arg3: memref<128x128xi8, #tpu.memory_space<vmem>>, %arg4: memref<128x128xbf16, #tpu.memory_space<vmem>>, %arg5: memref<128x1xf32, #tpu.memory_space<vmem>>, %arg6: memref<1x128xf32, #tpu.memory_space<vmem>>, %arg7: memref<128x128xbf16, #tpu.memory_space<vmem>>, %arg8: memref<128x128xf32, #tpu.memory_space<vmem>>) attributes {dimension_semantics = [#tpu.dimension_semantics<parallel>, #tpu.dimension_semantics<parallel>, #tpu.dimension_semantics<arbitrary>], iteration_bounds = array<i64: 3, 1, 3>, scalar_prefetch = 0 : i64, scratch_operands = 1 : i64, tpu.core_type = #tpu.core_type<tc>, window_params = [{transform_indices = @transform_0, window_bounds = array<i64: 128, 128>}, {transform_indices = @transform_1, window_bounds = array<i64: 128, 128>}, {transform_indices = @transform_2, window_bounds = array<i64: 128, 1>}, {transform_indices = @transform_3, window_bounds = array<i64: 1, 128>}, {transform_indices = @transform_4, window_bounds = array<i64: 128, 128>}]} {
    %c0_i32 = arith.constant 0 : i32
    %0 = arith.cmpi eq, %arg2, %c0_i32 : i32
    %1 = arith.extui %0 : i1 to i32
    %c0_i32_0 = arith.constant 0 : i32
    %2 = arith.cmpi ne, %1, %c0_i32_0 : i32
    scf.if %2 {
      %cst_9 = arith.constant 0.000000e+00 : f32
      %13 = vector.broadcast %cst_9 : f32 to vector<128x128xf32>
      %c0_10 = arith.constant 0 : index
      %c0_11 = arith.constant 0 : index
      %14 = vector.load %arg8[%c0_10, %c0_11] : memref<128x128xf32, #tpu.memory_space<vmem>>, vector<128x128xf32>
      tpu.vector_store %arg8[%c0_10, %c0_11], %13 {strides = array<i32>} : memref<128x128xf32, #tpu.memory_space<vmem>>, vector<128x128xf32>,
    } else {
    }
    %c0 = arith.constant 0 : index
    %c0_1 = arith.constant 0 : index
    %3 = vector.load %arg3[%c0, %c0_1] : memref<128x128xi8, #tpu.memory_space<vmem>>, vector<128x128xi8>
    %4 = arith.sitofp %3 : vector<128x128xi8> to vector<128x128xbf16>
    %c0_2 = arith.constant 0 : index
    %c0_3 = arith.constant 0 : index
    %5 = vector.load %arg8[%c0_2, %c0_3] : memref<128x128xf32, #tpu.memory_space<vmem>>, vector<128x128xf32>
    %c0_4 = arith.constant 0 : index
    %c0_5 = arith.constant 0 : index
    %6 = vector.load %arg4[%c0_4, %c0_5] : memref<128x128xbf16, #tpu.memory_space<vmem>>, vector<128x128xbf16>
    %cst = arith.constant dense<0.000000e+00> : vector<128x128xf32>
    %7 = tpu.matmul %4, %6, %cst {dimension_numbers = #tpu.dot_dimension_numbers<[1], [0], [0], [1], [0, 0, 1, 1], [], []>} : vector<128x128xbf16>, vector<128x128xbf16>, vector<128x128xf32> -> vector<128x128xf32>
    %8 = arith.addf %5, %7 : vector<128x128xf32>
    %c0_6 = arith.constant 0 : index
    %c0_7 = arith.constant 0 : index
    %9 = vector.load %arg8[%c0_6, %c0_7] : memref<128x128xf32, #tpu.memory_space<vmem>>, vector<128x128xf32>
    tpu.vector_store %arg8[%c0_6, %c0_7], %8 {strides = array<i32>} : memref<128x128xf32, #tpu.memory_space<vmem>>, vector<128x128xf32>,
    %c2_i32 = arith.constant 2 : i32
    %10 = arith.cmpi eq, %arg2, %c2_i32 : i32
    %11 = arith.extui %10 : i1 to i32
    %c0_i32_8 = arith.constant 0 : i32
    %12 = arith.cmpi ne, %11, %c0_i32_8 : i32
    scf.if %12 {
      %c0_9 = arith.constant 0 : index
      %c0_10 = arith.constant 0 : index
      %13 = vector.load %arg5[%c0_9, %c0_10] : memref<128x1xf32, #tpu.memory_space<vmem>>, vector<128x1xf32>
      %c0_11 = arith.constant 0 : index
      %c0_12 = arith.constant 0 : index
      %14 = vector.load %arg8[%c0_11, %c0_12] : memref<128x128xf32, #tpu.memory_space<vmem>>, vector<128x128xf32>
      %15 = vector.broadcast %13 : vector<128x1xf32> to vector<128x128xf32>
      %16 = arith.mulf %15, %14 : vector<128x128xf32>
      %c0_13 = arith.constant 0 : index
      %c0_14 = arith.constant 0 : index
      %17 = vector.load %arg6[%c0_13, %c0_14] : memref<1x128xf32, #tpu.memory_space<vmem>>, vector<1x128xf32>
      %18 = vector.broadcast %17 : vector<1x128xf32> to vector<128x128xf32>
      %19 = arith.addf %16, %18 : vector<128x128xf32>
      %cst_15 = arith.constant 0.000000e+00 : f32
      %20 = vector.broadcast %cst_15 : f32 to vector<128x128xf32>
      %21 = arith.maximumf %19, %20 : vector<128x128xf32>
      %22 = arith.truncf %21 : vector<128x128xf32> to vector<128x128xbf16>
      %c0_16 = arith.constant 0 : index
      %c0_17 = arith.constant 0 : index
      %23 = vector.load %arg7[%c0_16, %c0_17] : memref<128x128xbf16, #tpu.memory_space<vmem>>, vector<128x128xbf16>
      tpu.vector_store %arg7[%c0_16, %c0_17], %22 {strides = array<i32>} : memref<128x128xbf16, #tpu.memory_space<vmem>>, vector<128x128xbf16>,
    } else {
    }
    return
  }
  func.func @transform_0(%arg0: i32, %arg1: i32, %arg2: i32) -> (i32, i32) {
    %c0_i32 = arith.constant 0 : i32
    return %arg0, %arg2 : i32, i32
  }
  func.func @transform_1(%arg0: i32, %arg1: i32, %arg2: i32) -> (i32, i32) {
    %c0_i32 = arith.constant 0 : i32
    return %arg2, %arg1 : i32, i32
  }
  func.func @transform_2(%arg0: i32, %arg1: i32, %arg2: i32) -> (i32, i32) {
    %c0_i32 = arith.constant 0 : i32
    %c0_i32_0 = arith.constant 0 : i32
    return %arg0, %c0_i32 : i32, i32
  }
  func.func @transform_3(%arg0: i32, %arg1: i32, %arg2: i32) -> (i32, i32) {
    %c0_i32 = arith.constant 0 : i32
    %c0_i32_0 = arith.constant 0 : i32
    return %c0_i32, %arg1 : i32, i32
  }
  func.func @transform_4(%arg0: i32, %arg1: i32, %arg2: i32) -> (i32, i32) {
    %c0_i32 = arith.constant 0 : i32
    return %arg0, %arg1 : i32, i32
  }
}

module attributes {stable_mosaic.version = 11 : i64} {
  func.func @gcn_prep_kernel(%arg0: i32, %arg1: i32, %arg2: memref<128x128xi8, #tpu.memory_space<vmem>>, %arg3: memref<128x128xi8, #tpu.memory_space<vmem>>, %arg4: memref<1x128xf32, #tpu.memory_space<vmem>>, %arg5: memref<1x128xf32, #tpu.memory_space<vmem>>) attributes {dimension_semantics = [#tpu.dimension_semantics<parallel>, #tpu.dimension_semantics<arbitrary>], iteration_bounds = array<i64: 3, 3>, scalar_prefetch = 0 : i64, scratch_operands = 1 : i64, tpu.core_type = #tpu.core_type<tc>, window_params = [{transform_indices = @transform_0, window_bounds = array<i64: 128, 128>}, {transform_indices = @transform_1, window_bounds = array<i64: 128, 128>}, {transform_indices = @transform_2, window_bounds = array<i64: 1, 128>}]} {
    %c0_i32 = arith.constant 0 : i32
    %0 = arith.cmpi eq, %arg1, %c0_i32 : i32
    %1 = arith.extui %0 : i1 to i32
    %c0_i32_0 = arith.constant 0 : i32
    %2 = arith.cmpi ne, %1, %c0_i32_0 : i32
    scf.if %2 {
      %cst_11 = arith.constant 0.000000e+00 : f32
      %27 = vector.broadcast %cst_11 : f32 to vector<1x128xf32>
      %c0_12 = arith.constant 0 : index
      %c0_13 = arith.constant 0 : index
      %28 = vector.load %arg5[%c0_12, %c0_13] : memref<1x128xf32, #tpu.memory_space<vmem>>, vector<1x128xf32>
      tpu.vector_store %arg5[%c0_12, %c0_13], %27 {strides = array<i32>} : memref<1x128xf32, #tpu.memory_space<vmem>>, vector<1x128xf32>,
    } else {
    }
    %c0 = arith.constant 0 : index
    %c0_1 = arith.constant 0 : index
    %3 = vector.load %arg2[%c0, %c0_1] : memref<128x128xi8, #tpu.memory_space<vmem>>, vector<128x128xi8>
    %4 = tpu.iota {dimensions = array<i32: 0>} : vector<128x128xi32>
    %c128_i32 = arith.constant 128 : i32
    %5 = arith.muli %arg1, %c128_i32 : i32
    %6 = vector.broadcast %5 : i32 to vector<128x128xi32>
    %7 = arith.addi %4, %6 : vector<128x128xi32>
    %8 = tpu.iota {dimensions = array<i32: 1>} : vector<128x128xi32>
    %c128_i32_2 = arith.constant 128 : i32
    %9 = arith.muli %arg0, %c128_i32_2 : i32
    %10 = vector.broadcast %9 : i32 to vector<128x128xi32>
    %11 = arith.addi %8, %10 : vector<128x128xi32>
    %12 = arith.cmpi eq, %7, %11 : vector<128x128xi32>
    %13 = arith.sitofp %3 : vector<128x128xi8> to vector<128x128xf32>
    %cst = arith.constant 1.000000e+00 : f32
    %14 = vector.broadcast %cst : f32 to vector<128x128xf32>
    %15 = arith.select %12, %14, %13 : vector<128x128xi1>, vector<128x128xf32>
    %16 = tpu.transpose %15, [1, 0] : vector<128x128xf32> -> vector<128x128xf32>
    %17 = arith.fptosi %16 : vector<128x128xf32> to vector<128x128xi8>
    %c0_3 = arith.constant 0 : index
    %c0_4 = arith.constant 0 : index
    %18 = vector.load %arg3[%c0_3, %c0_4] : memref<128x128xi8, #tpu.memory_space<vmem>>, vector<128x128xi8>
    tpu.vector_store %arg3[%c0_3, %c0_4], %17 {strides = array<i32>} : memref<128x128xi8, #tpu.memory_space<vmem>>, vector<128x128xi8>,
    %c0_5 = arith.constant 0 : index
    %c0_6 = arith.constant 0 : index
    %19 = vector.load %arg5[%c0_5, %c0_6] : memref<1x128xf32, #tpu.memory_space<vmem>>, vector<1x128xf32>
    %cst_7 = arith.constant dense<0.000000e+00> : vector<128xf32>
    %20 = vector.multi_reduction <add>, %15, %cst_7 [0] : vector<128x128xf32> to vector<128xf32>
    %21 = vector.shape_cast %20 : vector<128xf32> to vector<1x128xf32>
    %22 = arith.addf %19, %21 : vector<1x128xf32>
    %c0_8 = arith.constant 0 : index
    %c0_9 = arith.constant 0 : index
    %23 = vector.load %arg5[%c0_8, %c0_9] : memref<1x128xf32, #tpu.memory_space<vmem>>, vector<1x128xf32>
    tpu.vector_store %arg5[%c0_8, %c0_9], %22 {strides = array<i32>} : memref<1x128xf32, #tpu.memory_space<vmem>>, vector<1x128xf32>,
    %c2_i32 = arith.constant 2 : i32
    %24 = arith.cmpi eq, %arg1, %c2_i32 : i32
    %25 = arith.extui %24 : i1 to i32
    %c0_i32_10 = arith.constant 0 : i32
    %26 = arith.cmpi ne, %25, %c0_i32_10 : i32
    scf.if %26 {
      %c0_11 = arith.constant 0 : index
      %c0_12 = arith.constant 0 : index
      %27 = vector.load %arg5[%c0_11, %c0_12] : memref<1x128xf32, #tpu.memory_space<vmem>>, vector<1x128xf32>
      %28 = math.rsqrt %27 : vector<1x128xf32>
      %c0_13 = arith.constant 0 : index
      %c0_14 = arith.constant 0 : index
      %29 = vector.load %arg4[%c0_13, %c0_14] : memref<1x128xf32, #tpu.memory_space<vmem>>, vector<1x128xf32>
      tpu.vector_store %arg4[%c0_13, %c0_14], %28 {strides = array<i32>} : memref<1x128xf32, #tpu.memory_space<vmem>>, vector<1x128xf32>,
    } else {
    }
    return
  }
  func.func @transform_0(%arg0: i32, %arg1: i32) -> (i32, i32) {
    %c0_i32 = arith.constant 0 : i32
    return %arg1, %arg0 : i32, i32
  }
  func.func @transform_1(%arg0: i32, %arg1: i32) -> (i32, i32) {
    %c0_i32 = arith.constant 0 : i32
    return %arg0, %arg1 : i32, i32
  }
  func.func @transform_2(%arg0: i32, %arg1: i32) -> (i32, i32) {
    %c0_i32 = arith.constant 0 : i32
    %c0_i32_0 = arith.constant 0 : i32
    return %c0_i32, %arg0 : i32, i32
  }
}

module attributes {stable_mosaic.version = 11 : i64} {
  func.func @gcn_agg_kernel(%arg0: i32, %arg1: i32, %arg2: i32, %arg3: memref<128x128xi8, #tpu.memory_space<vmem>>, %arg4: memref<128x128xbf16, #tpu.memory_space<vmem>>, %arg5: memref<128x1xf32, #tpu.memory_space<vmem>>, %arg6: memref<1x128xf32, #tpu.memory_space<vmem>>, %arg7: memref<128x128xf32, #tpu.memory_space<vmem>>, %arg8: memref<128x128xf32, #tpu.memory_space<vmem>>) attributes {dimension_semantics = [#tpu.dimension_semantics<parallel>, #tpu.dimension_semantics<parallel>, #tpu.dimension_semantics<arbitrary>], iteration_bounds = array<i64: 3, 1, 3>, scalar_prefetch = 0 : i64, scratch_operands = 1 : i64, tpu.core_type = #tpu.core_type<tc>, window_params = [{transform_indices = @transform_0, window_bounds = array<i64: 128, 128>}, {transform_indices = @transform_1, window_bounds = array<i64: 128, 128>}, {transform_indices = @transform_2, window_bounds = array<i64: 128, 1>}, {transform_indices = @transform_3, window_bounds = array<i64: 1, 128>}, {transform_indices = @transform_4, window_bounds = array<i64: 128, 128>}]} {
    %c0_i32 = arith.constant 0 : i32
    %0 = arith.cmpi eq, %arg2, %c0_i32 : i32
    %1 = arith.extui %0 : i1 to i32
    %c0_i32_0 = arith.constant 0 : i32
    %2 = arith.cmpi ne, %1, %c0_i32_0 : i32
    scf.if %2 {
      %cst_9 = arith.constant 0.000000e+00 : f32
      %13 = vector.broadcast %cst_9 : f32 to vector<128x128xf32>
      %c0_10 = arith.constant 0 : index
      %c0_11 = arith.constant 0 : index
      %14 = vector.load %arg8[%c0_10, %c0_11] : memref<128x128xf32, #tpu.memory_space<vmem>>, vector<128x128xf32>
      tpu.vector_store %arg8[%c0_10, %c0_11], %13 {strides = array<i32>} : memref<128x128xf32, #tpu.memory_space<vmem>>, vector<128x128xf32>,
    } else {
    }
    %c0 = arith.constant 0 : index
    %c0_1 = arith.constant 0 : index
    %3 = vector.load %arg3[%c0, %c0_1] : memref<128x128xi8, #tpu.memory_space<vmem>>, vector<128x128xi8>
    %4 = arith.sitofp %3 : vector<128x128xi8> to vector<128x128xbf16>
    %c0_2 = arith.constant 0 : index
    %c0_3 = arith.constant 0 : index
    %5 = vector.load %arg8[%c0_2, %c0_3] : memref<128x128xf32, #tpu.memory_space<vmem>>, vector<128x128xf32>
    %c0_4 = arith.constant 0 : index
    %c0_5 = arith.constant 0 : index
    %6 = vector.load %arg4[%c0_4, %c0_5] : memref<128x128xbf16, #tpu.memory_space<vmem>>, vector<128x128xbf16>
    %cst = arith.constant dense<0.000000e+00> : vector<128x128xf32>
    %7 = tpu.matmul %4, %6, %cst {dimension_numbers = #tpu.dot_dimension_numbers<[1], [0], [0], [1], [0, 0, 1, 1], [], []>} : vector<128x128xbf16>, vector<128x128xbf16>, vector<128x128xf32> -> vector<128x128xf32>
    %8 = arith.addf %5, %7 : vector<128x128xf32>
    %c0_6 = arith.constant 0 : index
    %c0_7 = arith.constant 0 : index
    %9 = vector.load %arg8[%c0_6, %c0_7] : memref<128x128xf32, #tpu.memory_space<vmem>>, vector<128x128xf32>
    tpu.vector_store %arg8[%c0_6, %c0_7], %8 {strides = array<i32>} : memref<128x128xf32, #tpu.memory_space<vmem>>, vector<128x128xf32>,
    %c2_i32 = arith.constant 2 : i32
    %10 = arith.cmpi eq, %arg2, %c2_i32 : i32
    %11 = arith.extui %10 : i1 to i32
    %c0_i32_8 = arith.constant 0 : i32
    %12 = arith.cmpi ne, %11, %c0_i32_8 : i32
    scf.if %12 {
      %c0_9 = arith.constant 0 : index
      %c0_10 = arith.constant 0 : index
      %13 = vector.load %arg5[%c0_9, %c0_10] : memref<128x1xf32, #tpu.memory_space<vmem>>, vector<128x1xf32>
      %c0_11 = arith.constant 0 : index
      %c0_12 = arith.constant 0 : index
      %14 = vector.load %arg8[%c0_11, %c0_12] : memref<128x128xf32, #tpu.memory_space<vmem>>, vector<128x128xf32>
      %15 = vector.broadcast %13 : vector<128x1xf32> to vector<128x128xf32>
      %16 = arith.mulf %15, %14 : vector<128x128xf32>
      %c0_13 = arith.constant 0 : index
      %c0_14 = arith.constant 0 : index
      %17 = vector.load %arg6[%c0_13, %c0_14] : memref<1x128xf32, #tpu.memory_space<vmem>>, vector<1x128xf32>
      %18 = vector.broadcast %17 : vector<1x128xf32> to vector<128x128xf32>
      %19 = arith.addf %16, %18 : vector<128x128xf32>
      %cst_15 = arith.constant 0.000000e+00 : f32
      %20 = vector.broadcast %cst_15 : f32 to vector<128x128xf32>
      %21 = arith.maximumf %19, %20 : vector<128x128xf32>
      %c0_16 = arith.constant 0 : index
      %c0_17 = arith.constant 0 : index
      %22 = vector.load %arg7[%c0_16, %c0_17] : memref<128x128xf32, #tpu.memory_space<vmem>>, vector<128x128xf32>
      tpu.vector_store %arg7[%c0_16, %c0_17], %21 {strides = array<i32>} : memref<128x128xf32, #tpu.memory_space<vmem>>, vector<128x128xf32>,
    } else {
    }
    return
  }
  func.func @transform_0(%arg0: i32, %arg1: i32, %arg2: i32) -> (i32, i32) {
    %c0_i32 = arith.constant 0 : i32
    return %arg0, %arg2 : i32, i32
  }
  func.func @transform_1(%arg0: i32, %arg1: i32, %arg2: i32) -> (i32, i32) {
    %c0_i32 = arith.constant 0 : i32
    return %arg2, %arg1 : i32, i32
  }
  func.func @transform_2(%arg0: i32, %arg1: i32, %arg2: i32) -> (i32, i32) {
    %c0_i32 = arith.constant 0 : i32
    %c0_i32_0 = arith.constant 0 : i32
    return %arg0, %c0_i32 : i32, i32
  }
  func.func @transform_3(%arg0: i32, %arg1: i32, %arg2: i32) -> (i32, i32) {
    %c0_i32 = arith.constant 0 : i32
    %c0_i32_0 = arith.constant 0 : i32
    return %c0_i32, %arg1 : i32, i32
  }
  func.func @transform_4(%arg0: i32, %arg1: i32, %arg2: i32) -> (i32, i32) {
    %c0_i32 = arith.constant 0 : i32
    return %arg0, %arg1 : i32, i32
  }
}

module attributes {stable_mosaic.version = 11 : i64} {
  func.func @gcn_xw_kernel(%arg0: i32, %arg1: i32, %arg2: i32, %arg3: memref<128x128xbf16, #tpu.memory_space<vmem>>, %arg4: memref<128x128xbf16, #tpu.memory_space<vmem>>, %arg5: memref<128x1xf32, #tpu.memory_space<vmem>>, %arg6: memref<128x128xbf16, #tpu.memory_space<vmem>>, %arg7: memref<128x128xf32, #tpu.memory_space<vmem>>) attributes {dimension_semantics = [#tpu.dimension_semantics<parallel>, #tpu.dimension_semantics<parallel>, #tpu.dimension_semantics<arbitrary>], iteration_bounds = array<i64: 3, 1, 1>, scalar_prefetch = 0 : i64, scratch_operands = 1 : i64, tpu.core_type = #tpu.core_type<tc>, window_params = [{transform_indices = @transform_0, window_bounds = array<i64: 128, 128>}, {transform_indices = @transform_1, window_bounds = array<i64: 128, 128>}, {transform_indices = @transform_2, window_bounds = array<i64: 128, 1>}, {transform_indices = @transform_3, window_bounds = array<i64: 128, 128>}]} {
    %c0_i32 = arith.constant 0 : i32
    %0 = arith.cmpi eq, %arg2, %c0_i32 : i32
    %1 = arith.extui %0 : i1 to i32
    %c0_i32_0 = arith.constant 0 : i32
    %2 = arith.cmpi ne, %1, %c0_i32_0 : i32
    scf.if %2 {
      %cst_10 = arith.constant 0.000000e+00 : f32
      %12 = vector.broadcast %cst_10 : f32 to vector<128x128xf32>
      %c0_11 = arith.constant 0 : index
      %c0_12 = arith.constant 0 : index
      %13 = vector.load %arg7[%c0_11, %c0_12] : memref<128x128xf32, #tpu.memory_space<vmem>>, vector<128x128xf32>
      tpu.vector_store %arg7[%c0_11, %c0_12], %12 {strides = array<i32>} : memref<128x128xf32, #tpu.memory_space<vmem>>, vector<128x128xf32>,
    } else {
    }
    %c0 = arith.constant 0 : index
    %c0_1 = arith.constant 0 : index
    %3 = vector.load %arg7[%c0, %c0_1] : memref<128x128xf32, #tpu.memory_space<vmem>>, vector<128x128xf32>
    %c0_2 = arith.constant 0 : index
    %c0_3 = arith.constant 0 : index
    %4 = vector.load %arg3[%c0_2, %c0_3] : memref<128x128xbf16, #tpu.memory_space<vmem>>, vector<128x128xbf16>
    %c0_4 = arith.constant 0 : index
    %c0_5 = arith.constant 0 : index
    %5 = vector.load %arg4[%c0_4, %c0_5] : memref<128x128xbf16, #tpu.memory_space<vmem>>, vector<128x128xbf16>
    %cst = arith.constant dense<0.000000e+00> : vector<128x128xf32>
    %6 = tpu.matmul %4, %5, %cst {dimension_numbers = #tpu.dot_dimension_numbers<[1], [0], [0], [1], [0, 0, 1, 1], [], []>} : vector<128x128xbf16>, vector<128x128xbf16>, vector<128x128xf32> -> vector<128x128xf32>
    %7 = arith.addf %3, %6 : vector<128x128xf32>
    %c0_6 = arith.constant 0 : index
    %c0_7 = arith.constant 0 : index
    %8 = vector.load %arg7[%c0_6, %c0_7] : memref<128x128xf32, #tpu.memory_space<vmem>>, vector<128x128xf32>
    tpu.vector_store %arg7[%c0_6, %c0_7], %7 {strides = array<i32>} : memref<128x128xf32, #tpu.memory_space<vmem>>, vector<128x128xf32>,
    %c0_i32_8 = arith.constant 0 : i32
    %9 = arith.cmpi eq, %arg2, %c0_i32_8 : i32
    %10 = arith.extui %9 : i1 to i32
    %c0_i32_9 = arith.constant 0 : i32
    %11 = arith.cmpi ne, %10, %c0_i32_9 : i32
    scf.if %11 {
      %c0_10 = arith.constant 0 : index
      %c0_11 = arith.constant 0 : index
      %12 = vector.load %arg5[%c0_10, %c0_11] : memref<128x1xf32, #tpu.memory_space<vmem>>, vector<128x1xf32>
      %c0_12 = arith.constant 0 : index
      %c0_13 = arith.constant 0 : index
      %13 = vector.load %arg7[%c0_12, %c0_13] : memref<128x128xf32, #tpu.memory_space<vmem>>, vector<128x128xf32>
      %14 = vector.broadcast %12 : vector<128x1xf32> to vector<128x128xf32>
      %15 = arith.mulf %14, %13 : vector<128x128xf32>
      %16 = arith.truncf %15 : vector<128x128xf32> to vector<128x128xbf16>
      %c0_14 = arith.constant 0 : index
      %c0_15 = arith.constant 0 : index
      %17 = vector.load %arg6[%c0_14, %c0_15] : memref<128x128xbf16, #tpu.memory_space<vmem>>, vector<128x128xbf16>
      tpu.vector_store %arg6[%c0_14, %c0_15], %16 {strides = array<i32>} : memref<128x128xbf16, #tpu.memory_space<vmem>>, vector<128x128xbf16>,
    } else {
    }
    return
  }
  func.func @transform_0(%arg0: i32, %arg1: i32, %arg2: i32) -> (i32, i32) {
    %c0_i32 = arith.constant 0 : i32
    return %arg0, %arg2 : i32, i32
  }
  func.func @transform_1(%arg0: i32, %arg1: i32, %arg2: i32) -> (i32, i32) {
    %c0_i32 = arith.constant 0 : i32
    return %arg2, %arg1 : i32, i32
  }
  func.func @transform_2(%arg0: i32, %arg1: i32, %arg2: i32) -> (i32, i32) {
    %c0_i32 = arith.constant 0 : i32
    %c0_i32_0 = arith.constant 0 : i32
    return %arg0, %c0_i32 : i32, i32
  }
  func.func @transform_3(%arg0: i32, %arg1: i32, %arg2: i32) -> (i32, i32) {
    %c0_i32 = arith.constant 0 : i32
    return %arg0, %arg1 : i32, i32
  }
}

</mosaic_0001>

<bundles_post_ra>
// kernel: vanilla_gcn_feature_embedding.5
= control target key start
LH: loop header
LB: loop body
LE: loop exit
PB: predicated region body
PF: predicated region fallthrough
CT: control target
= control target key end

     0   :  { %s757_s9 = smov 0   ;;  %s759_s10 = smov 0   ;;  %s940_s0 = inlined_call_operand.vmem [shape: s8[384,384], index: 0, kind: input, shape index: {}]   ;;  %s941_s1 = inlined_call_operand.vmem [shape: s8[384,384], index: 1, kind: output, shape index: {0}]   ;;  %s942_s2 = inlined_call_operand.vmem [shape: f32[1,384], index: 2, kind: output, shape index: {1}]  }
   0x1   :  { %s761_s11 = smov 0   ;;  %s763_s12 = smov 0  }
   0x2   :  { %s765_s13 = smov 0   ;;  %s767_s14 = smov 0  }
   0x3   :  { %s769_s15 = smov 0  }
   0x4 LB: > { %s22_s16 = sadd.s32 1, %s731_s13  ;;  %s25_s17 = sadd.s32 1, %s735_s14  ;;  %s739_s15 = sphi %s769_s15, %s13_s15   ;;  %s735_s14 = sphi %s767_s14, %s949_s14   ;;  %s731_s13 = sphi %s765_s13, %s948_s13   ;;  %s727_s12 = sphi %s763_s12, %s947_s12   ;;  %s723_s11 = sphi %s761_s11, %s946_s11   ;;  %s719_s10 = sphi %s759_s10, %s945_s10   ;;  %s715_s9 = sphi %s757_s9, %s944_s9  }
   0x5   : > { %p23_p0 = scmp.ge.s32.totalorder %s22_s16, 3  ;;  %s603_s18 = sadd.s32 4294967295, %s739_s15  }
   0x6   : > { %p41_p1 = scmp.ne.s32.totalorder %s719_s10, %s715_s9  ;;  %p42_p2 = scmp.eq.s32.totalorder %s739_s15, 0 }
   0x7   : > { %s951_s16 = smov (%p23_p0, %s22_s16), 0  ;;  %s953_s17 = smov (!%p23_p0, %s25_s17), %s735_s14 }
   0x8   : > { %p27_p3 = scmp.ge.s32.totalorder %s953_s17, 3  ;;  %p73_p4 = scmp.eq.s32.totalorder %s603_s18, 8 }
   0x9   : > { %s29_s19 = ssub.s32 %s731_s13, %s951_s16  ;;  %p43_p5 = por %p42_p2, %p41_p1 }
   0xa   : > { %s955_s17 = smov (%p27_p3, %s953_s17), 0  ;;  %p805_p6 = por %p73_p4, %p41_p1 }
   0xb   : > { %s30_s21 = ssub.s32 %s735_s14, %s955_s17  ;;  %s34_s23 = sadd.s32 1, %s719_s10 }
   0xc   : > { %s31_s22 = sor.u32 %s30_s21, %s29_s19  ;;  %p606_p8 = scmp.ge.s32.totalorder %s739_s15, 9 }
   0xd   : > { %p32_p7 = scmp.eq.s32.totalorder %s31_s22, 0 }
   0xe   : > { %121 = sbr.rel (%p606_p8) target bundleno = 30 (0x1e), region = 16 }
   0xf   : > { %s813_s24 = scalar_select %p32_p7, %s719_s10, %s34_s23  }
  0x15   : > { %124 = sbr.rel (!%p43_p5) target bundleno = 30 (0x1e), region = 20  ;;  %s126_s25 = sand.u32 (%p43_p5), 1, %s719_s10  }
  0x16   : > { %s624_s26 = smul.u32 (%p43_p5), 12, %s731_s13  ;;  %s607_s27 = sshll.u32 (%p43_p5), %s126_s25, 5 }
  0x17   : > { %s128_s5 = scalar_lea.vmem (%p43_p5), [#allocation3], %s607_s27 }
  0x18   : > { %s131_s28 = sadd.s32 (%p43_p5), %s735_s14, %s624_s26 }
  0x19   : > { %s610_s29 = sshll.u32 (%p43_p5), %s131_s28, 3 }
  0x1a   : > { %s133_s4 = scalar_lea.vmem (%p43_p5), %s940_s0, %s610_s29 }
  0x1b   : > { %v167_v0 = vld [vmem:[%s133_s4] sm:$0xff] (%p43_p5)  ;;  %v169_v1 = vld [vmem:[%s133_s4 + $0x18] sm:$0xff] (%p43_p5)  ;;  %v171_v2 = vld [vmem:[%s133_s4 + $0x30] sm:$0xff] (%p43_p5) }
  0x1c   : > { %168 = vst [vmem:[%s128_s5] sm:$0xff] %v167_v0  ;;  %170 = vst [vmem:[%s128_s5 + $0x8] sm:$0xff] %v169_v1  ;;  %v173_v3 = vld [vmem:[%s133_s4 + $0x48] sm:$0xff] }
  0x1d   : > { %172 = vst [vmem:[%s128_s5 + $0x10] sm:$0xff] %v171_v2  ;;  %174 = vst [vmem:[%s128_s5 + $0x18] sm:$0xff] %v173_v3 }
  0x1e PF: > { %p611_p9 = scmp.ge.s32.totalorder %s739_s15, 1  ;;  %p179_p10 = scmp.lt.s32.totalorder %s739_s15, 10 }
  0x20   : > { %p180_p11 = pnand %p611_p9, %p179_p10 }
  0x21   : > { %s186_s6 = sand.u32 (!%p180_p11), 1, %s715_s9   ;;  %p211_p12 = scmp.lt.s32.totalorder (!%p180_p11), %s727_s12, 2 }
  0x22   : > { %183 = sbr.rel (%p180_p11) target bundleno = 261 (0x105), region = 58  ;;  %s612_s7 = sshll.u32 (!%p180_p11), %s186_s6, 5 }
  0x23   : > { %s833_s22 = scalar_lea.vmem (!%p180_p11), [#allocation3], %s612_s7  ;;  %s835_s23 = scalar_lea.vmem (!%p180_p11), [#allocation4], %s612_s7 }
  0x24   : > { %p614_p13 = scmp.ne.s32.totalorder (!%p180_p11), %s723_s11, 0 }
  0x29   : > { %s827_s8 = scalar_select %p211_p12, %s727_s12, 2 }
  0x2a   : > { %217 = sbr.rel (%p614_p13) target bundleno = 49 (0x31), region = 66  ;;  %v741_v4 = vmov (!%p614_p13), 0.0  }
  0x2b   : > { %s213_s21 = scalar_lea.vmem %s942_s2, %s827_s8  ;;  %218 = vst [vmem:[#allocation2] sm:$0x1] (!%p614_p13), %v741_v4 }
  0x31 PF: > { %v219_v5 = vld [vmem:[%s833_s22] sm:$0xff]  ;;  %v223_v6 = vlaneseq  ;;  %s615_s9 = sshll.u32 %s723_s11, 7  ;;  %s616_s25 = sshll.u32 %s727_s12, 7  ;;  %v220_v15 = vld [vmem:[%s833_s22 + $0x8] sm:$0xff]  ;;  %v221_v44 = vld [vmem:[%s833_s22 + $0x10] sm:$0xff] }
  0x32   : > { %v841_v7 = vstv %s615_s9  ;;  %v261_v8 = vstv %s616_s25  ;;  %v279_v9 = vunpack.c.0.s8 %v219_v5  ;;  %v280_v10 = vunpack.c.1.s8 %v219_v5  ;;  %p617_p0 = scmp.ne.s32.totalorder %s723_s11, 2 }
  0x33   : > { %v843_v11 = vshrl.u32 %v223_v6, 7  ;;  %v259_v12 = vand.u32 127, %v223_v6  ;;  %v281_v14 = vunpack.c.2.s8 %v219_v5  ;;  %v282_v22 = vunpack.c.3.s8 %v219_v5  ;;  %v222_v5 = vld [vmem:[%s833_s22 + $0x18] sm:$0xff] }
  0x34   : > { %v295_v13 = vcvt.s32.f32 %v279_v9  ;;  %v296_v20 = vcvt.s32.f32 %v280_v10  ;;  %v283_v26 = vunpack.c.0.s8 %v220_v15  ;;  %v284_v35 = vunpack.c.1.s8 %v220_v15 }
  0x35   : > { %v242_v16 = vadd.s32 %v841_v7, %v843_v11  ;;  %v848_v17 = vadd.s32 %v261_v8, %v259_v12  ;;  %v225_v18 = vadd.s32 8, %v843_v11  ;;  %v226_v19 = vadd.s32 16, %v843_v11 }
  0x36   : > { %v227_v21 = vadd.s32 24, %v843_v11  ;;  %v228_v23 = vadd.s32 32, %v843_v11  ;;  %v297_v28 = vcvt.s32.f32 %v281_v14  ;;  %v229_v30 = vadd.s32 40, %v843_v11 }
  0x37   : > { %vm263_vm0 = vcmp.eq.s32.totalorder %v242_v16, %v848_v17  ;;  %v243_v24 = vadd.s32 %v841_v7, %v225_v18  ;;  %v244_v25 = vadd.s32 %v841_v7, %v226_v19  ;;  %v230_v32 = vadd.s32 48, %v843_v11 }
  0x38   : > { %v311_v27 = vsel %vm263_vm0, 1.0, %v295_v13  ;;  %v245_v29 = vadd.s32 %v841_v7, %v227_v21  ;;  %v246_v31 = vadd.s32 %v841_v7, %v228_v23  ;;  %v298_v34 = vcvt.s32.f32 %v282_v22 }
  0x39   : > { %327 = vxpose.xlu0.b32.start [1/16] %v311_v27, 128  ;;  %vm264_vm1 = vcmp.eq.s32.totalorder %v243_v24, %v848_v17  ;;  %vm265_vm2 = vcmp.eq.s32.totalorder %v244_v25, %v848_v17  ;;  %v247_v37 = vadd.s32 %v841_v7, %v229_v30  ;;  %v299_v39 = vcvt.s32.f32 %v283_v26 }
  0x3a   : > { %v312_v33 = vsel %vm264_vm1, 1.0, %v296_v20  ;;  %vm266_vm3 = vcmp.eq.s32.totalorder %v245_v29, %v848_v17  ;;  %v313_v38 = vsel %vm265_vm2, 1.0, %v297_v28  ;;  %v285_v40 = vunpack.c.2.s8 %v220_v15 }
  0x3b   : > { %v420_v36 = vadd.f32 %v312_v33, %v311_v27  ;;  %v231_v41 = vadd.s32 56, %v843_v11  ;;  %vm267_vm4 = vcmp.eq.s32.totalorder %v246_v31, %v848_v17  ;;  %v248_v43 = vadd.s32 %v841_v7, %v230_v32 }
  0x3c   : > { %v232_v45 = vadd.s32 64, %v843_v11  ;;  %v314_v46 = vsel %vm266_vm3, 1.0, %v298_v34  ;;  %v300_v47 = vcvt.s32.f32 %v284_v35  ;;  %v286_v48 = vunpack.c.3.s8 %v220_v15 }
  0x3d   : > { %328 = vxpose.xlu0.b32.cont [2/16] %v312_v33, 128  ;;  %v421_v42 = vadd.f32 %v420_v36, %v313_v38  ;;  %vm268_vm5 = vcmp.eq.s32.totalorder %v247_v37, %v848_v17  ;;  %v249_v50 = vadd.s32 %v841_v7, %v231_v41  ;;  %v315_v51 = vsel %vm267_vm4, 1.0, %v299_v39 }
  0x3e   : > { %v301_v52 = vcvt.s32.f32 %v285_v40  ;;  %v287_v53 = vunpack.c.0.s8 %v221_v44  ;;  %v233_v54 = vadd.s32 72, %v843_v11  ;;  %vm269_vm6 = vcmp.eq.s32.totalorder %v248_v43, %v848_v17 }
  0x3f   : > { %v422_v49 = vadd.f32 %v421_v42, %v314_v46  ;;  %v250_v56 = vadd.s32 %v841_v7, %v232_v45  ;;  %v234_v57 = vadd.s32 80, %v843_v11  ;;  %v316_v58 = vsel %vm268_vm5, 1.0, %v300_v47 }
  0x40   : > { %v302_v59 = vcvt.s32.f32 %v286_v48  ;;  %v288_v60 = vunpack.c.1.s8 %v221_v44  ;;  %vm270_vm7 = vcmp.eq.s32.totalorder %v249_v50, %v848_v17  ;;  %v251_v62 = vadd.s32 %v841_v7, %v233_v54 }
  0x41   : > { %329 = vxpose.xlu0.b32.cont [3/16] %v313_v38, 128  ;;  %v423_v55 = vadd.f32 %v422_v49, %v315_v51  ;;  %v235_v63 = vadd.s32 88, %v843_v11  ;;  %v317_v0 = vsel %vm269_vm6, 1.0, %v301_v52  ;;  %v303_v1 = vcvt.s32.f32 %v287_v53 }
  0x42   : > { %v289_v2 = vunpack.c.2.s8 %v221_v44  ;;  %vm271_vm8 = vcmp.eq.s32.totalorder %v250_v56, %v848_v17  ;;  %v252_v4 = vadd.s32 %v841_v7, %v234_v57  ;;  %v236_v6 = vadd.s32 96, %v843_v11 }
  0x43   : > { %v424_v61 = vadd.f32 %v423_v55, %v316_v58  ;;  %v318_v8 = vsel %vm270_vm7, 1.0, %v302_v59  ;;  %v304_v9 = vcvt.s32.f32 %v288_v60  ;;  %v290_v10 = vunpack.c.3.s8 %v221_v44 }
  0x44   : > { %vm272_vm9 = vcmp.eq.s32.totalorder %v251_v62, %v848_v17  ;;  %v253_v13 = vadd.s32 %v841_v7, %v235_v63  ;;  %v237_v14 = vadd.s32 104, %v843_v11  ;;  %v319_v15 = vsel %vm271_vm8, 1.0, %v303_v1 }
  0x45   : > { %330 = vxpose.xlu0.b32.cont [4/16] %v314_v46, 128  ;;  %v425_v3 = vadd.f32 %v424_v61, %v317_v0  ;;  %v305_v16 = vcvt.s32.f32 %v289_v2  ;;  %v291_v18 = vunpack.c.0.s8 %v222_v5  ;;  %vm273_vm10 = vcmp.eq.s32.totalorder %v252_v4, %v848_v17 }
  0x46   : > { %v254_v20 = vadd.s32 %v841_v7, %v236_v6  ;;  %v238_v21 = vadd.s32 112, %v843_v11  ;;  %v320_v22 = vsel %vm272_vm9, 1.0, %v304_v9  ;;  %v306_v23 = vcvt.s32.f32 %v290_v10 }
  0x47   : > { %v426_v12 = vadd.f32 %v425_v3, %v318_v8  ;;  %v292_v24 = vunpack.c.1.s8 %v222_v5  ;;  %vm274_vm11 = vcmp.eq.s32.totalorder %v253_v13, %v848_v17  ;;  %v255_v26 = vadd.s32 %v841_v7, %v237_v14 }
  0x48   : > { %v239_v27 = vadd.s32 120, %v843_v11  ;;  %v321_v28 = vsel %vm273_vm10, 1.0, %v305_v16  ;;  %v307_v29 = vcvt.s32.f32 %v291_v18  ;;  %v293_v30 = vunpack.c.2.s8 %v222_v5 }
  0x49   : > { %331 = vxpose.xlu0.b32.cont [5/16] %v315_v51, 128  ;;  %v427_v19 = vadd.f32 %v426_v12, %v319_v15  ;;  %vm275_vm12 = vcmp.eq.s32.totalorder %v254_v20, %v848_v17  ;;  %v256_v32 = vadd.s32 %v841_v7, %v238_v21  ;;  %v322_v33 = vsel %vm274_vm11, 1.0, %v306_v23  ;;  %v419_v51 = vld [vmem:[#allocation2] sm:$0x1] }
  0x4a   : > { %v308_v34 = vcvt.s32.f32 %v292_v24  ;;  %v294_v35 = vunpack.c.3.s8 %v222_v5  ;;  %vm276_vm13 = vcmp.eq.s32.totalorder %v255_v26, %v848_v17  ;;  %v257_v37 = vadd.s32 %v841_v7, %v239_v27 }
  0x4b   : > { %v428_v25 = vadd.f32 %v427_v19, %v320_v22  ;;  %v323_v38 = vsel %vm275_vm12, 1.0, %v307_v29  ;;  %v309_v39 = vcvt.s32.f32 %v293_v30  ;;  %vm277_vm14 = vcmp.eq.s32.totalorder %v256_v32, %v848_v17 }
  0x4c   : > { %v324_v40 = vsel %vm276_vm13, 1.0, %v308_v34  ;;  %v310_v41 = vcvt.s32.f32 %v294_v35  ;;  %vm278_vm15 = vcmp.eq.s32.totalorder %v257_v37, %v848_v17 }
  0x4d   : > { %332 = vxpose.xlu0.b32.cont [6/16] %v316_v58, 128  ;;  %v429_v31 = vadd.f32 %v428_v25, %v321_v28  ;;  %v325_v43 = vsel %vm277_vm14, 1.0, %v309_v39 }
  0x4e   : > { %v326_v45 = vsel %vm278_vm15, 1.0, %v310_v41 }
  0x4f   : > { %v430_v36 = vadd.f32 %v429_v31, %v322_v33 }
  0x51   : > { %333 = vxpose.xlu0.b32.cont [7/16] %v317_v0, 128  ;;  %v431_v11 = vadd.f32 %v430_v36, %v323_v38 }
  0x53   : > { %v432_v42 = vadd.f32 %v431_v11, %v324_v40 }
  0x55   : > { %334 = vxpose.xlu0.b32.cont [8/16] %v318_v8, 128  ;;  %v433_v44 = vadd.f32 %v432_v42, %v325_v43 }
  0x57   : > { %v434_v46 = vadd.f32 %v433_v44, %v326_v45 }
  0x59   : > { %335 = vxpose.xlu0.b32.cont [9/16] %v319_v15, 128  ;;  %v435_v47 = vrot.slane %v434_v46, 4 }
  0x5b   : > { %v436_v48 = vadd.f32 %v435_v47, %v434_v46 }
  0x5d   : > { %336 = vxpose.xlu0.b32.cont [10/16] %v320_v22, 128  ;;  %v437_v7 = vrot.slane %v436_v48, 2 }
  0x5f   : > { %v438_v49 = vadd.f32 %v437_v7, %v436_v48 }
  0x61   : > { %337 = vxpose.xlu0.b32.cont [11/16] %v321_v28, 128  ;;  %v439_v50 = vrot.slane %v438_v49, 1 }
  0x63   : > { %v440_v52 = vadd.f32 %v439_v50, %v438_v49 }
  0x65   : > { %338 = vxpose.xlu0.b32.cont [12/16] %v322_v33, 128  ;;  %v441_v53 = vadd.f32 %v440_v52, %v419_v51 }
  0x67   : > { %442 = vst [vmem:[#allocation2] sm:$0x1] %v441_v53 }
  0x69   : > { %339 = vxpose.xlu0.b32.cont [13/16] %v323_v38, 128 }
  0x6d   : > { %340 = vxpose.xlu0.b32.cont [14/16] %v324_v40, 128 }
  0x6e   : > { %v447_v36 = vld [vmem:[#allocation2] sm:$0x1] (!%p617_p0) }
  0x6f   : > { %683 = vrsqrt.f32 (!%p617_p0), %v447_v36 }
  0x71   : > { %341 = vxpose.xlu0.b32.cont [15/16] %v325_v43, 128 }
  0x75   : > { %342 = vxpose.xlu0.b32.end [16/16] %v326_v45, 128 }
  0x79   : > { %v684_v37 = vpop.eup (!%p617_p0), %683 }
  0x7a   : > { %449 = vst [vmem:[%s213_s21] sm:$0x1] (!%p617_p0), %v684_v37 }
  0xb9   : > { %v343_v17 = vpop.trf.xlu0 }
  0xba   : > { %v359_v58 = vtrunc.f32 %v343_v17 }
  0xbd   : > { %v344_v54 = vpop.trf.xlu0 }
  0xbe   : > { %v360_v56 = vtrunc.f32 %v344_v54 }
  0xc0   : > { %v375_v61 = vpack.c.f32.eXmY %v359_v58, %v360_v56, 312 }
  0xc1   : > { %v345_v55 = vpop.trf.xlu0 }
  0xc2   : > { %v361_v59 = vtrunc.f32 %v345_v55 }
  0xc5   : > { %v346_v57 = vpop.trf.xlu0 }
  0xc6   : > { %v362_v60 = vtrunc.f32 %v346_v57 }
  0xc8   : > { %v379_v62 = vpack.c.f32.eXmY %v361_v59, %v362_v60, 312 }
  0xc9   : > { %v347_v63 = vpop.trf.xlu0 }
  0xca   : > { %v383_v0 = vpack.c.b8 %v379_v62, %v375_v61  ;;  %v363_v5 = vtrunc.f32 %v347_v63 }
  0xcc   : > { %415 = vst [vmem:[%s835_s23] sm:$0xff] %v383_v0 }
  0xcd   : > { %v348_v1 = vpop.trf.xlu0 }
  0xce   : > { %v364_v3 = vtrunc.f32 %v348_v1 }
  0xd0   : > { %v385_v9 = vpack.c.f32.eXmY %v363_v5, %v364_v3, 312 }
  0xd1   : > { %v349_v2 = vpop.trf.xlu0 }
  0xd2   : > { %v365_v6 = vtrunc.f32 %v349_v2 }
  0xd5   : > { %v350_v4 = vpop.trf.xlu0 }
  0xd6   : > { %v366_v8 = vtrunc.f32 %v350_v4 }
  0xd8   : > { %v389_v10 = vpack.c.f32.eXmY %v365_v6, %v366_v8, 312 }
  0xd9   : > { %v351_v12 = vpop.trf.xlu0 }
  0xda   : > { %v393_v13 = vpack.c.b8 %v389_v10, %v385_v9  ;;  %v367_v19 = vtrunc.f32 %v351_v12 }
  0xdc   : > { %416 = vst [vmem:[%s835_s23 + $0x8] sm:$0xff] %v393_v13 }
  0xdd   : > { %v352_v14 = vpop.trf.xlu0 }
  0xde   : > { %v368_v16 = vtrunc.f32 %v352_v14 }
  0xe0   : > { %v395_v22 = vpack.c.f32.eXmY %v367_v19, %v368_v16, 312 }
  0xe1   : > { %v353_v15 = vpop.trf.xlu0 }
  0xe2   : > { %v369_v20 = vtrunc.f32 %v353_v15 }
  0xe5   : > { %v354_v18 = vpop.trf.xlu0 }
  0xe6   : > { %v370_v21 = vtrunc.f32 %v354_v18 }
  0xe8   : > { %v399_v23 = vpack.c.f32.eXmY %v369_v20, %v370_v21, 312 }
  0xe9   : > { %v355_v24 = vpop.trf.xlu0 }
  0xea   : > { %v403_v25 = vpack.c.b8 %v399_v23, %v395_v22  ;;  %v371_v30 = vtrunc.f32 %v355_v24 }
  0xec   : > { %417 = vst [vmem:[%s835_s23 + $0x10] sm:$0xff] %v403_v25 }
  0xed   : > { %v356_v26 = vpop.trf.xlu0 }
  0xee   : > { %v372_v28 = vtrunc.f32 %v356_v26 }
  0xf0   : > { %v405_v33 = vpack.c.f32.eXmY %v371_v30, %v372_v28, 312 }
  0xf1   : > { %v357_v27 = vpop.trf.xlu0 }
  0xf2   : > { %v373_v31 = vtrunc.f32 %v357_v27 }
  0xf5   : > { %v358_v29 = vpop.trf.xlu0 }
  0xf6   : > { %v374_v32 = vtrunc.f32 %v358_v29  ;;  %446 = sbr.rel (%p617_p0) target bundleno = 253 (0xfd), region = 70 }
  0xf8   : > { %v409_v34 = vpack.c.f32.eXmY %v373_v31, %v374_v32, 312 }
  0xfa   : > { %v413_v35 = vpack.c.b8 %v409_v34, %v405_v33 }
  0xfc   : > { %418 = vst [vmem:[%s835_s23 + $0x18] sm:$0xff] %v413_v35 }
  0xfd PF: > { %459 = sbr.rel (!%p805_p6) target bundleno = 261 (0x105), region = 74  ;;  %v498_v38 = vld [vmem:[%s835_s23] sm:$0xff] (%p805_p6)  ;;  %v500_v39 = vld [vmem:[%s835_s23 + $0x8] sm:$0xff] (%p805_p6)  ;;  %v502_v11 = vld [vmem:[%s835_s23 + $0x10] sm:$0xff] (%p805_p6) }
  0xfe   : > { %s625_s28 = smul.u32 (%p805_p6), 12, %s727_s12 }
 0x100   : > { %s462_s29 = sadd.s32 (%p805_p6), %s723_s11, %s625_s28 }
 0x101   : > { %s621_s30 = sshll.u32 (%p805_p6), %s462_s29, 3 }
 0x102   : > { %s464_s5 = scalar_lea.vmem (%p805_p6), %s941_s1, %s621_s30 }
 0x103   : > { %v504_v40 = vld [vmem:[%s835_s23 + $0x18] sm:$0xff] (%p805_p6)  ;;  %499 = vst [vmem:[%s464_s5] sm:$0xff] (%p805_p6), %v498_v38  ;;  %501 = vst [vmem:[%s464_s5 + $0x18] sm:$0xff] (%p805_p6), %v500_v39 }
 0x104   : > { %503 = vst [vmem:[%s464_s5 + $0x30] sm:$0xff] %v502_v11  ;;  %505 = vst [vmem:[%s464_s5 + $0x48] sm:$0xff] %v504_v40 }
 0x105 PF: > { %s13_s15 = sadd.s32 1, %s739_s15   ;;  %s944_s9 = smov %s719_s10 }
 0x106   : > { %p10_p1 = scmp.ge.s32.totalorder %s13_s15, 11   ;;  %s945_s10 = smov %s813_s24 }
 0x107   : > { %s946_s11 = smov %s731_s13  ;;  %s947_s12 = smov %s735_s14 }
 0x108   : > { %s948_s13 = smov %s951_s16  ;;  %s949_s14 = smov %s955_s17 }
 0x109   :  { %12 = sbr.rel (!%p10_p1) target bundleno = 4 (0x4), region = 155 }

// kernel: vanilla_gcn_feature_embedding.7
= control target key start
LH: loop header
LB: loop body
LE: loop exit
PB: predicated region body
PF: predicated region fallthrough
CT: control target
= control target key end

     0   :  { %s1293_s15 = smov 0   ;;  %s1295_s16 = smov 0   ;;  %s1455_s0 = inlined_call_operand.vmem [shape: s8[384,384], index: 0, kind: input, shape index: {}]   ;;  %s1456_s1 = inlined_call_operand.vmem [shape: bf16[384,128], index: 1, kind: input, shape index: {}]   ;;  %s1457_s2 = inlined_call_operand.vmem [shape: f32[384,1], index: 2, kind: input, shape index: {}]   ;;  %s1458_s3 = inlined_call_operand.vmem [shape: f32[1,128], index: 3, kind: input, shape index: {}]   ;;  %s1459_s4 = inlined_call_operand.vmem [shape: bf16[384,128], index: 4, kind: output, shape index: {}]  }
   0x1   :  { %s1297_s17 = smov 0   ;;  %s1299_s18 = smov 0  }
   0x2   :  { %s1301_s19 = smov 0   ;;  %s1303_s20 = smov 0  }
   0x3   :  { %s1305_s21 = smov 0  }
   0x4 LB: > { %s26_s22 = sadd.s32 1, %s1256_s19  ;;  %s33_s23 = sadd.s32 1, %s1260_s20  ;;  %s1264_s21 = sphi %s1305_s21, %s14_s21   ;;  %s1260_s20 = sphi %s1303_s20, %s1465_s20   ;;  %s1256_s19 = sphi %s1301_s19, %s1464_s19   ;;  %s1252_s18 = sphi %s1299_s18, %s1463_s18   ;;  %s1248_s17 = sphi %s1297_s17, %s1462_s17   ;;  %s1244_s16 = sphi %s1295_s16, %s1461_s16   ;;  %s1240_s15 = sphi %s1293_s15, %s1460_s15  }
   0x5   : > { %p27_p0 = scmp.ge.s32.totalorder %s26_s22, 3  ;;  %p49_p1 = scmp.ne.s32.totalorder %s1244_s16, %s1240_s15 }
   0x6   : > { %p50_p2 = scmp.eq.s32.totalorder %s1264_s21, 0  ;;  %s42_s27 = sadd.s32 1, %s1244_s16 }
   0x7   : > { %s1467_s22 = smov (%p27_p0, %s26_s22), 0  ;;  %s1469_s23 = smov (!%p27_p0, %s33_s23), %s1260_s20 }
   0x8   : > { %p51_p3 = por %p50_p2, %p49_p1  ;;  %p35_p4 = scmp.ge.s32.totalorder %s1469_s23, 3 }
   0x9   : > { %s38_s24 = ssub.s32 %s1256_s19, %s1467_s22  ;;  %p972_p6 = scmp.ge.s32.totalorder %s1264_s21, 9 }
   0xa   : > { %s1471_s23 = smov (%p35_p4, %s1469_s23), 0 }
   0xb   : > { %s37_s25 = ssub.s32 %s1260_s20, %s1471_s23  ;;  %189 = sbr.rel (%p972_p6) target bundleno = 27 (0x1b), region = 20 }
   0xc   : > { %s39_s26 = sor.u32 %s38_s24, %s37_s25 }
   0xd   : > { %p40_p5 = scmp.eq.s32.totalorder %s39_s26, 0 }
   0xf   : > { %s1344_s28 = scalar_select %p40_p5, %s1244_s16, %s42_s27  }
  0x12   : > { %192 = sbr.rel (!%p51_p3) target bundleno = 27 (0x1b), region = 24  ;;  %s194_s29 = sand.u32 (%p51_p3), 1, %s1244_s16  }
  0x13   : > { %s1141_s30 = smul.u32 (%p51_p3), 12, %s1260_s20  ;;  %s973_s5 = sshll.u32 (%p51_p3), %s194_s29, 5 }
  0x14   : > { %s196_s11 = scalar_lea.vmem (%p51_p3), [#allocation3], %s973_s5 }
  0x15   : > { %s199_s6 = sadd.s32 (%p51_p3), %s1256_s19, %s1141_s30 }
  0x16   : > { %s976_s7 = sshll.u32 (%p51_p3), %s199_s6, 3 }
  0x17   : > { %s201_s10 = scalar_lea.vmem (%p51_p3), %s1455_s0, %s976_s7 }
  0x18   : > { %v235_v0 = vld [vmem:[%s201_s10] sm:$0xff] (%p51_p3)  ;;  %v237_v1 = vld [vmem:[%s201_s10 + $0x18] sm:$0xff] (%p51_p3)  ;;  %v239_v2 = vld [vmem:[%s201_s10 + $0x30] sm:$0xff] (%p51_p3) }
  0x19   : > { %236 = vst [vmem:[%s196_s11] sm:$0xff] %v235_v0  ;;  %238 = vst [vmem:[%s196_s11 + $0x8] sm:$0xff] %v237_v1  ;;  %v241_v3 = vld [vmem:[%s201_s10 + $0x48] sm:$0xff] }
  0x1a   : > { %240 = vst [vmem:[%s196_s11 + $0x10] sm:$0xff] %v239_v2  ;;  %242 = vst [vmem:[%s196_s11 + $0x18] sm:$0xff] %v241_v3 }
  0x1b PF: > { %p977_p7 = scmp.ge.s32.totalorder %s1264_s21, 1  ;;  %p268_p8 = scmp.lt.s32.totalorder %s1264_s21, 10 }
  0x1d   : > { %p269_p9 = pnand %p977_p7, %p268_p8 }
  0x1e   : > { %s275_s12 = sand.u32 (!%p269_p9), 1, %s1240_s15   ;;  %s979_s13 = sshll.u32 (!%p269_p9), %s1248_s17, 4 }
  0x1f   : > { %272 = sbr.rel (%p269_p9) target bundleno = 432 (0x1b0), region = 70  ;;  %s978_s14 = sshll.u32 (!%p269_p9), %s275_s12, 5 }
  0x20   : > { %p321_p10 = scmp.lt.s32.totalorder (!%p269_p9), %s979_s13, 47  ;;  %s981_s24 = sshll.u32 (!%p269_p9), %s1252_s18, 4 }
  0x21   : > { %p330_p11 = scmp.lt.s32.totalorder (!%p269_p9), %s981_s24, 47  ;;  %s1373_s10 = scalar_lea.vmem (!%p269_p9), [#allocation3], %s978_s14 }
  0x22   : > { %p985_p12 = scmp.ne.s32.totalorder (!%p269_p9), %s1248_s17, 0 }
  0x26   : > { %s1473_s13 = smov (!%p321_p10, %s979_s13), 47  ;;  %s1475_s24 = smov (!%p330_p11, %s981_s24), 47 }
  0x27   : > { %s980_s25 = sshll.u32 %s1473_s13, 2  ;;  %s982_s30 = sshll.u32 %s1475_s24, 3  ;;  %v1266_v4 = vmov (!%p985_p12), 0.0  }
  0x28   : > { %s1361_s29 = scalar_lea.vmem %s1456_s1, %s980_s25  ;;  %s984_s5 = sshll.u32 %s1475_s24, 2  ;;  %352 = vst [vmem:[#allocation2] sm:$0xff] (!%p985_p12), %v1266_v4  ;;  %353 = vst [vmem:[#allocation2 + $0x8] sm:$0xff] (!%p985_p12), %v1266_v4 }
  0x29   : > { %s1366_s8 = scalar_lea.vmem %s1457_s2, %s982_s30  ;;  %s1371_s18 = scalar_lea.vmem %s1459_s4, %s984_s5  ;;  %354 = vst [vmem:[#allocation2 + $0x10] sm:$0xff] (!%p985_p12), %v1266_v4  ;;  %355 = vst [vmem:[#allocation2 + $0x18] sm:$0xff] (!%p985_p12), %v1266_v4 }
  0x2a   : > { %351 = sbr.rel (%p985_p12) target bundleno = 49 (0x31), region = 78  ;;  %356 = vst [vmem:[#allocation2 + $0x20] sm:$0xff] (!%p985_p12), %v1266_v4  ;;  %357 = vst [vmem:[#allocation2 + $0x28] sm:$0xff] (!%p985_p12), %v1266_v4 }
  0x2b   : > { %358 = vst [vmem:[#allocation2 + $0x30] sm:$0xff] (!%p985_p12), %v1266_v4  ;;  %359 = vst [vmem:[#allocation2 + $0x38] sm:$0xff] (!%p985_p12), %v1266_v4 }
  0x2c   : > { %360 = vst [vmem:[#allocation2 + $0x40] sm:$0xff] (!%p985_p12), %v1266_v4  ;;  %361 = vst [vmem:[#allocation2 + $0x48] sm:$0xff] (!%p985_p12), %v1266_v4 }
  0x2d   : > { %362 = vst [vmem:[#allocation2 + $0x50] sm:$0xff] (!%p985_p12), %v1266_v4  ;;  %363 = vst [vmem:[#allocation2 + $0x58] sm:$0xff] (!%p985_p12), %v1266_v4 }
  0x2e   : > { %364 = vst [vmem:[#allocation2 + $0x60] sm:$0xff] (!%p985_p12), %v1266_v4  ;;  %365 = vst [vmem:[#allocation2 + $0x68] sm:$0xff] (!%p985_p12), %v1266_v4 }
  0x2f   : > { %366 = vst [vmem:[#allocation2 + $0x70] sm:$0xff] (!%p985_p12), %v1266_v4  ;;  %367 = vst [vmem:[#allocation2 + $0x78] sm:$0xff] (!%p985_p12), %v1266_v4 }
  0x31 PF: > { %v1200_v5 = vld [vmem:[%s1361_s29] sm:$0xff]   ;;  %v1201_v6 = vld [vmem:[%s1361_s29 + $0x8] sm:$0xff]   ;;  %v1202_v7 = vld [vmem:[%s1361_s29 + $0x10] sm:$0xff]   ;;  %p994_p13 = scmp.ne.s32.totalorder %s1248_s17, 2 }
  0x32   : > { %1093 = vmatprep.subr.bf16.mxu0 %v1200_v5  ;;  %1125 = vmatprep.subr.bf16.mxu1 %v1200_v5  ;;  %v1203_v8 = vld [vmem:[%s1361_s29 + $0x18] sm:$0xff]   ;;  %v368_v9 = vld [vmem:[%s1373_s10] sm:$0xff]  ;;  %v370_v10 = vld [vmem:[%s1373_s10 + $0x10] sm:$0xff] }
  0x33   : > { %1094 = vmatpush3.bf16.msra.mxu0 %v1200_v5  ;;  %1133 = vmatpush3.bf16.msra.mxu1 %v1200_v5  ;;  %v372_v11 = vunpack.c.l.s8.bf16 %v368_v9  ;;  %v376_v12 = vunpack.c.l.s8.bf16 %v370_v10  ;;  %v1204_v13 = vld [vmem:[%s1361_s29 + $0x20] sm:$0xff]   ;;  %v1205_v14 = vld [vmem:[%s1361_s29 + $0x28] sm:$0xff]   ;;  %v1206_v15 = vld [vmem:[%s1361_s29 + $0x30] sm:$0xff]   ;;  %v373_v19 = vunpack.c.h.s8.bf16 %v368_v9  ;;  %v377_v20 = vunpack.c.h.s8.bf16 %v370_v10 }
  0x34   : > { %1095 = vmatprep.subr.bf16.mxu0 %v1201_v6  ;;  %1126 = vmatprep.subr.bf16.mxu1 %v1201_v6  ;;  %v1207_v16 = vld [vmem:[%s1361_s29 + $0x38] sm:$0xff]   ;;  %v369_v17 = vld [vmem:[%s1373_s10 + $0x8] sm:$0xff]  ;;  %v382_v25 = vld [vmem:[#allocation2 + $0x10] sm:$0xff] }
  0x35   : > { %1109 = vmatprep.mubr.bf16.mxu0 %v372_v11  ;;  %1117 = vmatprep.mubr.bf16.mxu1 %v376_v12  ;;  %v371_v18 = vld [vmem:[%s1373_s10 + $0x18] sm:$0xff]  ;;  %v374_v21 = vunpack.c.l.s8.bf16 %v369_v17  ;;  %v375_v23 = vunpack.c.h.s8.bf16 %v369_v17  ;;  %v390_v26 = vld [vmem:[#allocation2 + $0x50] sm:$0xff]  ;;  %v380_v27 = vld [vmem:[#allocation2] sm:$0xff]  ;;  %v1267_v11 = vmov (!%p994_p13), 0  }
  0x36   : > { %v378_v22 = vunpack.c.l.s8.bf16 %v371_v18  ;;  %v379_v24 = vunpack.c.h.s8.bf16 %v371_v18  ;;  %v388_v28 = vld [vmem:[#allocation2 + $0x40] sm:$0xff]  ;;  %v383_v31 = vld [vmem:[#allocation2 + $0x18] sm:$0xff]  ;;  %v381_v37 = vld [vmem:[#allocation2 + $0x8] sm:$0xff]  ;;  %1209 = vset.pattern.permute.xlu1 (!%p994_p13), %v1267_v11  ;;  %1208 = vset.pattern.permute.xlu0 (!%p994_p13), %v1267_v11 }
  0x37   : > { %1096 = vmatpush3.bf16.msra.mxu0 %v1201_v6  ;;  %1134 = vmatpush3.bf16.msra.mxu1 %v1201_v6  ;;  %v391_v32 = vld [vmem:[#allocation2 + $0x58] sm:$0xff]  ;;  %v389_v38 = vld [vmem:[#allocation2 + $0x48] sm:$0xff]  ;;  %v386_v49 = vld [vmem:[#allocation2 + $0x30] sm:$0xff] }
  0x38   : > { %1097 = vmatprep.subr.bf16.mxu0 %v1202_v7  ;;  %1127 = vmatprep.subr.bf16.mxu1 %v1202_v7  ;;  %v394_v50 = vld [vmem:[#allocation2 + $0x70] sm:$0xff]  ;;  %v384_v51 = vld [vmem:[#allocation2 + $0x20] sm:$0xff]  ;;  %v387_v55 = vld [vmem:[#allocation2 + $0x38] sm:$0xff] }
  0x39   : > { %v392_v52 = vld [vmem:[#allocation2 + $0x60] sm:$0xff]  ;;  %v395_v56 = vld [vmem:[#allocation2 + $0x78] sm:$0xff]  ;;  %v385_v61 = vld [vmem:[#allocation2 + $0x28] sm:$0xff] }
  0x3a   : > { %v393_v62 = vld [vmem:[#allocation2 + $0x68] sm:$0xff]  ;;  %v595_v9 = vld [vmem:[%s1366_s8 + $0x10] sm:$0xff] (!%p994_p13)  ;;  %v593_v10 = vld [vmem:[%s1366_s8] sm:$0xff] (!%p994_p13) }
  0x3b   : > { %1098 = vmatpush3.bf16.msra.mxu0 %v1202_v7  ;;  %1135 = vmatpush3.bf16.msra.mxu1 %v1202_v7  ;;  %v596_v12 = vld [vmem:[%s1366_s8 + $0x18] sm:$0xff] (!%p994_p13)  ;;  %v599_v17 = vld [vmem:[%s1366_s8 + $0x30] sm:$0xff] (!%p994_p13)  ;;  %v602_v18 = vld [vmem:[%s1366_s8 + $0x48] sm:$0xff] (!%p994_p13) }
  0x3c   : > { %1099 = vmatprep.subr.bf16.mxu0 %v1203_v8  ;;  %1128 = vmatprep.subr.bf16.mxu1 %v1203_v8 }
  0x3d   : > { %637 = vperm.xlu1 (!%p994_p13), %1209, %v595_v9   ;;  %627 = vperm.xlu0 (!%p994_p13), %1208, %v593_v10  }
  0x3f   : > { %1100 = vmatpush3.bf16.msra.mxu0 %v1203_v8  ;;  %1136 = vmatpush3.bf16.msra.mxu1 %v1203_v8 }
  0x40   : > { %1101 = vmatprep.subr.bf16.mxu0 %v1204_v13  ;;  %1129 = vmatprep.subr.bf16.mxu1 %v1204_v13 }
  0x41   : > { %642 = vperm.xlu1 (!%p994_p13), %1209, %v596_v12  }
  0x43   : > { %1102 = vmatpush3.bf16.msra.mxu0 %v1204_v13  ;;  %1137 = vmatpush3.bf16.msra.mxu1 %v1204_v13  ;;  %v594_v13 = vld [vmem:[%s1366_s8 + $0x8] sm:$0xff] (!%p994_p13) }
  0x44   : > { %1103 = vmatprep.subr.bf16.mxu0 %v1205_v14  ;;  %1130 = vmatprep.subr.bf16.mxu1 %v1205_v14 }
  0x45   : > { %632 = vperm.xlu0 (!%p994_p13), %1208, %v594_v13  }
  0x47   : > { %1104 = vmatpush3.bf16.msra.mxu0 %v1205_v14  ;;  %1138 = vmatpush3.bf16.msra.mxu1 %v1205_v14  ;;  %v598_v14 = vld [vmem:[%s1366_s8 + $0x28] sm:$0xff] (!%p994_p13) }
  0x48   : > { %1105 = vmatprep.subr.bf16.mxu0 %v1206_v15  ;;  %1131 = vmatprep.subr.bf16.mxu1 %v1206_v15 }
  0x49   : > { %652 = vperm.xlu1 (!%p994_p13), %1209, %v598_v14  }
  0x4b   : > { %1106 = vmatpush3.bf16.msra.mxu0 %v1206_v15  ;;  %1139 = vmatpush3.bf16.msra.mxu1 %v1206_v15  ;;  %v597_v15 = vld [vmem:[%s1366_s8 + $0x20] sm:$0xff] (!%p994_p13) }
  0x4c   : > { %1107 = vmatprep.subr.bf16.mxu0 %v1207_v16  ;;  %1132 = vmatprep.subr.bf16.mxu1 %v1207_v16 }
  0x4d   : > { %647 = vperm.xlu0 (!%p994_p13), %1208, %v597_v15  }
  0x4f   : > { %1108 = vmatpush3.bf16.msra.mxu0 %v1207_v16  ;;  %1140 = vmatpush3.bf16.msra.mxu1 %v1207_v16  ;;  %v600_v16 = vld [vmem:[%s1366_s8 + $0x38] sm:$0xff] (!%p994_p13) }
  0x50   : > { %662 = vperm.xlu1 (!%p994_p13), %1209, %v600_v16  }
  0x51   : > { %657 = vperm.xlu0 (!%p994_p13), %1208, %v599_v17  }
  0x52   : > { %1110 = vmatmul.mubr.bf16.vlgmr.msra.gmra.mrb[0].mxu0 %v373_v19  ;;  %1118 = vmatmul.mubr.bf16.vlgmr.msra.gmra.mrb[0].mxu1 %v377_v20  ;;  %v601_v19 = vld [vmem:[%s1366_s8 + $0x40] sm:$0xff] (!%p994_p13)  ;;  %v604_v20 = vld [vmem:[%s1366_s8 + $0x58] sm:$0xff] (!%p994_p13) }
  0x53   : > { %1113 = vmatprep.mubr.bf16.mxu0 %v374_v21  ;;  %1121 = vmatprep.mubr.bf16.mxu1 %v378_v22  ;;  %v603_v21 = vld [vmem:[%s1366_s8 + $0x50] sm:$0xff] (!%p994_p13)  ;;  %v606_v22 = vld [vmem:[%s1366_s8 + $0x68] sm:$0xff] (!%p994_p13) }
  0x54   : > { %672 = vperm.xlu1 (!%p994_p13), %1209, %v602_v18  }
  0x55   : > { %667 = vperm.xlu0 (!%p994_p13), %1208, %v601_v19  }
  0x58   : > { %682 = vperm.xlu1 (!%p994_p13), %1209, %v604_v20  }
  0x59   : > { %677 = vperm.xlu0 (!%p994_p13), %1208, %v603_v21  }
  0x5a   : > { %1114 = vmatmul.mubr.bf16.gmra.mrb[4].mxu0 %v375_v23  ;;  %1122 = vmatmul.mubr.bf16.gmra.mrb[4].mxu1 %v379_v24  ;;  %v605_v23 = vld [vmem:[%s1366_s8 + $0x60] sm:$0xff] (!%p994_p13)  ;;  %v608_v24 = vld [vmem:[%s1366_s8 + $0x78] sm:$0xff] (!%p994_p13) }
  0x5c   : > { %692 = vperm.xlu1 (!%p994_p13), %1209, %v606_v22  }
  0x5d   : > { %687 = vperm.xlu0 (!%p994_p13), %1208, %v605_v23  }
  0x60   : > { %702 = vperm.xlu1 (!%p994_p13), %1209, %v608_v24  }
 0x125   : > { %v1111_v29 = vpop.f32.mrb[0].mxu0  ;;  %v1119_v30 = vpop.f32.mrb[0].mxu1 }
 0x126   : > { %v559_v33 = vadd.f32 %v1111_v29, %v382_v25  ;;  %v567_v34 = vadd.f32 %v1119_v30, %v390_v26  ;;  %v494_v35 = vpop.f32.mrb[1].mxu0  ;;  %v526_v36 = vpop.f32.mrb[1].mxu1  ;;  %v607_v25 = vld [vmem:[%s1366_s8 + $0x70] sm:$0xff] (!%p994_p13)  ;;  %v1408_v30 = vld [vmem:[%s1458_s3] ss:$0 sm:$0xff] (!%p994_p13) }
 0x127   : > { %v557_v39 = vadd.f32 %v494_v35, %v380_v27  ;;  %v565_v40 = vadd.f32 %v526_v36, %v388_v28  ;;  %v1112_v41 = vpop.f32.mrb[2].mxu0  ;;  %v1120_v42 = vpop.f32.mrb[2].mxu1  ;;  %697 = vperm.xlu0 (!%p994_p13), %1208, %v607_v25  }
 0x128   : > { %575 = vst [vmem:[#allocation2 + $0x10] sm:$0xff] %v559_v33  ;;  %583 = vst [vmem:[#allocation2 + $0x50] sm:$0xff] %v567_v34  ;;  %v560_v43 = vadd.f32 %v1112_v41, %v383_v31  ;;  %v568_v44 = vadd.f32 %v1120_v42, %v391_v32  ;;  %v497_v45 = vpop.f32.mrb[3].mxu0  ;;  %v529_v46 = vpop.f32.mrb[3].mxu1 }
 0x129   : > { %573 = vst [vmem:[#allocation2] sm:$0xff] %v557_v39  ;;  %581 = vst [vmem:[#allocation2 + $0x40] sm:$0xff] %v565_v40  ;;  %v558_v47 = vadd.f32 %v497_v45, %v381_v37  ;;  %v566_v48 = vadd.f32 %v529_v46, %v389_v38  ;;  %v638_v28 = vpop.permute.xlu1 (!%p994_p13), %637  ;;  %v628_v29 = vpop.permute.xlu0 (!%p994_p13), %627 }
 0x12a   : > { %576 = vst [vmem:[#allocation2 + $0x18] sm:$0xff] %v560_v43  ;;  %584 = vst [vmem:[#allocation2 + $0x58] sm:$0xff] %v568_v44 }
 0x12b   : > { %574 = vst [vmem:[#allocation2 + $0x8] sm:$0xff] %v558_v47  ;;  %582 = vst [vmem:[#allocation2 + $0x48] sm:$0xff] %v566_v48 }
 0x12d   : > { %v1115_v53 = vpop.f32.mrb[4].mxu0  ;;  %v1123_v54 = vpop.f32.mrb[4].mxu1  ;;  %592 = sbr.rel (%p994_p13) target bundleno = 432 (0x1b0), region = 82 }
 0x12e   : > { %v563_v57 = vadd.f32 %v1115_v53, %v386_v49  ;;  %v571_v58 = vadd.f32 %v1123_v54, %v394_v50  ;;  %v510_v59 = vpop.f32.mrb[5].mxu0  ;;  %v542_v60 = vpop.f32.mrb[5].mxu1 }
 0x12f   : > { %v561_v63 = vadd.f32 %v510_v59, %v384_v51  ;;  %v569_v0 = vadd.f32 %v542_v60, %v392_v52  ;;  %v1116_v1 = vpop.f32.mrb[6].mxu0  ;;  %v1124_v2 = vpop.f32.mrb[6].mxu1  ;;  %v611_v26 = vld [vmem:[#allocation2 + $0x10] sm:$0xff] (!%p994_p13) }
 0x130   : > { %579 = vst [vmem:[#allocation2 + $0x30] sm:$0xff] %v563_v57  ;;  %587 = vst [vmem:[#allocation2 + $0x70] sm:$0xff] %v571_v58  ;;  %v564_v3 = vadd.f32 %v1116_v1, %v387_v55  ;;  %v572_v4 = vadd.f32 %v1124_v2, %v395_v56  ;;  %v513_v5 = vpop.f32.mrb[7].mxu0  ;;  %v545_v6 = vpop.f32.mrb[7].mxu1  ;;  %v609_v27 = vld [vmem:[#allocation2] sm:$0xff] (!%p994_p13)  ;;  %v707_v31 = vmul.f32 (!%p994_p13), %v638_v28, %v611_v26  ;;  %v619_v13 = vld [vmem:[#allocation2 + $0x50] sm:$0xff] (!%p994_p13) }
 0x131   : > { %577 = vst [vmem:[#allocation2 + $0x20] sm:$0xff] %v561_v63  ;;  %585 = vst [vmem:[#allocation2 + $0x60] sm:$0xff] %v569_v0  ;;  %v562_v7 = vadd.f32 %v513_v5, %v385_v61  ;;  %v570_v8 = vadd.f32 %v545_v6, %v393_v62  ;;  %v705_v32 = vmul.f32 (!%p994_p13), %v628_v29, %v609_v27  ;;  %v612_v33 = vld [vmem:[#allocation2 + $0x18] sm:$0xff] (!%p994_p13)  ;;  %v643_v37 = vpop.permute.xlu1 (!%p994_p13), %642  ;;  %v633_v38 = vpop.permute.xlu0 (!%p994_p13), %632  ;;  %v617_v2 = vld [vmem:[#allocation2 + $0x40] sm:$0xff] (!%p994_p13) }
 0x132   : > { %580 = vst [vmem:[#allocation2 + $0x38] sm:$0xff] %v564_v3  ;;  %588 = vst [vmem:[#allocation2 + $0x78] sm:$0xff] %v572_v4  ;;  %v610_v34 = vld [vmem:[#allocation2 + $0x8] sm:$0xff] (!%p994_p13)  ;;  %v730_v35 = vadd.f32 (!%p994_p13), %v1408_v30, %v707_v31  ;;  %v708_v39 = vmul.f32 (!%p994_p13), %v643_v37, %v612_v33  ;;  %v620_v12 = vld [vmem:[#allocation2 + $0x58] sm:$0xff] (!%p994_p13) }
 0x133   : > { %578 = vst [vmem:[#allocation2 + $0x28] sm:$0xff] %v562_v7  ;;  %586 = vst [vmem:[#allocation2 + $0x68] sm:$0xff] %v570_v8  ;;  %v728_v36 = vadd.f32 (!%p994_p13), %v1408_v30, %v705_v32  ;;  %v706_v40 = vmul.f32 (!%p994_p13), %v633_v38, %v610_v34  ;;  %v618_v1 = vld [vmem:[#allocation2 + $0x48] sm:$0xff] (!%p994_p13) }
 0x134   : > { %v731_v43 = vadd.f32 %v1408_v30, %v708_v39  ;;  %v746_v45 = vmax.f32 %v730_v35, 0.0 }
 0x135   : > { %v729_v44 = vadd.f32 %v1408_v30, %v706_v40  ;;  %v744_v46 = vmax.f32 %v728_v36, 0.0  ;;  %v653_v47 = vpop.permute.xlu1 %652  ;;  %v648_v48 = vpop.permute.xlu0 %647 }
 0x136   : > { %v747_v49 = vmax.f32 %v731_v43, 0.0 }
 0x137   : > { %v745_v50 = vmax.f32 %v729_v44, 0.0  ;;  %v615_v54 = vld [vmem:[#allocation2 + $0x30] sm:$0xff] }
 0x138   : > { %v613_v42 = vld [vmem:[#allocation2 + $0x20] sm:$0xff]  ;;  %v1038_v55 = vpack.c.bf16 %v747_v49, %v746_v45  ;;  %v623_v36 = vld [vmem:[#allocation2 + $0x70] sm:$0xff] }
 0x139   : > { %v709_v52 = vmul.f32 %v648_v48, %v613_v42  ;;  %v616_v53 = vld [vmem:[#allocation2 + $0x38] sm:$0xff]  ;;  %v1033_v56 = vpack.c.bf16 %v745_v50, %v744_v46  ;;  %v663_v59 = vpop.permute.xlu1 %662  ;;  %v658_v60 = vpop.permute.xlu0 %657  ;;  %v621_v24 = vld [vmem:[#allocation2 + $0x60] sm:$0xff] }
 0x13a   : > { %v614_v41 = vld [vmem:[#allocation2 + $0x28] sm:$0xff]  ;;  %1070 = vst [vmem:[%s1371_s18 + $0x8] sm:$0xff] %v1038_v55   ;;  %v712_v63 = vmul.f32 %v663_v59, %v616_v53  ;;  %v711_v0 = vmul.f32 %v658_v60, %v615_v54  ;;  %v624_v35 = vld [vmem:[#allocation2 + $0x78] sm:$0xff] }
 0x13b   : > { %v710_v51 = vmul.f32 %v653_v47, %v614_v41  ;;  %v732_v58 = vadd.f32 %v1408_v30, %v709_v52  ;;  %1034 = vst [vmem:[%s1371_s18] sm:$0xff] %v1033_v56   ;;  %v622_v23 = vld [vmem:[#allocation2 + $0x68] sm:$0xff] }
 0x13c   : > { %v735_v4 = vadd.f32 %v1408_v30, %v712_v63  ;;  %v734_v5 = vadd.f32 %v1408_v30, %v711_v0 }
 0x13d   : > { %v733_v57 = vadd.f32 %v1408_v30, %v710_v51  ;;  %v748_v62 = vmax.f32 %v732_v58, 0.0  ;;  %v673_v6 = vpop.permute.xlu1 %672  ;;  %v668_v7 = vpop.permute.xlu0 %667 }
 0x13e   : > { %v751_v8 = vmax.f32 %v735_v4, 0.0  ;;  %v750_v9 = vmax.f32 %v734_v5, 0.0  ;;  %v714_v10 = vmul.f32 %v673_v6, %v618_v1  ;;  %v713_v11 = vmul.f32 %v668_v7, %v617_v2 }
 0x13f   : > { %v749_v61 = vmax.f32 %v733_v57, 0.0 }
 0x140   : > { %v1048_v14 = vpack.c.bf16 %v751_v8, %v750_v9  ;;  %v737_v15 = vadd.f32 %v1408_v30, %v714_v10  ;;  %v736_v16 = vadd.f32 %v1408_v30, %v713_v11 }
 0x141   : > { %v1043_v3 = vpack.c.bf16 %v749_v61, %v748_v62  ;;  %v683_v17 = vpop.permute.xlu1 %682  ;;  %v678_v18 = vpop.permute.xlu0 %677 }
 0x142   : > { %1072 = vst [vmem:[%s1371_s18 + $0x18] sm:$0xff] %v1048_v14   ;;  %v753_v19 = vmax.f32 %v737_v15, 0.0  ;;  %v752_v20 = vmax.f32 %v736_v16, 0.0  ;;  %v716_v21 = vmul.f32 %v683_v17, %v620_v12  ;;  %v715_v22 = vmul.f32 %v678_v18, %v619_v13 }
 0x143   : > { %1071 = vst [vmem:[%s1371_s18 + $0x10] sm:$0xff] %v1043_v3  }
 0x144   : > { %v1053_v25 = vpack.c.bf16 %v753_v19, %v752_v20  ;;  %v739_v26 = vadd.f32 %v1408_v30, %v716_v21  ;;  %v738_v27 = vadd.f32 %v1408_v30, %v715_v22 }
 0x145   : > { %v693_v28 = vpop.permute.xlu1 %692  ;;  %v688_v29 = vpop.permute.xlu0 %687 }
 0x146   : > { %1073 = vst [vmem:[%s1371_s18 + $0x20] sm:$0xff] %v1053_v25   ;;  %v755_v31 = vmax.f32 %v739_v26, 0.0  ;;  %v754_v32 = vmax.f32 %v738_v27, 0.0  ;;  %v718_v33 = vmul.f32 %v693_v28, %v622_v23  ;;  %v717_v34 = vmul.f32 %v688_v29, %v621_v24 }
 0x148   : > { %v1058_v37 = vpack.c.bf16 %v755_v31, %v754_v32  ;;  %v741_v38 = vadd.f32 %v1408_v30, %v718_v33  ;;  %v740_v39 = vadd.f32 %v1408_v30, %v717_v34 }
 0x149   : > { %v703_v40 = vpop.permute.xlu1 %702 }
 0x14a   : > { %1074 = vst [vmem:[%s1371_s18 + $0x28] sm:$0xff] %v1058_v37   ;;  %v757_v42 = vmax.f32 %v741_v38, 0.0  ;;  %v756_v43 = vmax.f32 %v740_v39, 0.0  ;;  %v720_v44 = vmul.f32 %v703_v40, %v624_v35 }
 0x14c   : > { %v1063_v46 = vpack.c.bf16 %v757_v42, %v756_v43  ;;  %v743_v47 = vadd.f32 %v1408_v30, %v720_v44 }
 0x14e   : > { %1075 = vst [vmem:[%s1371_s18 + $0x30] sm:$0xff] %v1063_v46   ;;  %v759_v49 = vmax.f32 %v743_v47, 0.0 }
 0x1a6   : > { %v698_v41 = vpop.permute.xlu0 %697 }
 0x1a7   : > { %v719_v45 = vmul.f32 %v698_v41, %v623_v36 }
 0x1a9   : > { %v742_v48 = vadd.f32 %v1408_v30, %v719_v45 }
 0x1ab   : > { %v758_v50 = vmax.f32 %v742_v48, 0.0 }
 0x1ad   : > { %v1068_v51 = vpack.c.bf16 %v759_v49, %v758_v50 }
 0x1af   : > { %1076 = vst [vmem:[%s1371_s18 + $0x38] sm:$0xff] %v1068_v51  }
 0x1b0 PF: > { %s14_s21 = sadd.s32 1, %s1264_s21   ;;  %s1460_s15 = smov %s1244_s16 }
 0x1b1   : > { %p11_p0 = scmp.ge.s32.totalorder %s14_s21, 11   ;;  %s1461_s16 = smov %s1344_s28 }
 0x1b2   : > { %s1462_s17 = smov %s1256_s19  ;;  %s1463_s18 = smov %s1260_s20 }
 0x1b3   : > { %s1464_s19 = smov %s1467_s22  ;;  %s1465_s20 = smov %s1471_s23 }
 0x1b4   :  { %13 = sbr.rel (!%p11_p0) target bundleno = 4 (0x4), region = 126 }

// kernel: vanilla_gcn_feature_embedding.9
= control target key start
LH: loop header
LB: loop body
LE: loop exit
PB: predicated region body
PF: predicated region fallthrough
CT: control target
= control target key end

     0   :  { %s1150_s15 = smov 0   ;;  %s1152_s16 = smov 0   ;;  %s1320_s0 = inlined_call_operand.vmem [shape: s8[384,384], index: 0, kind: input, shape index: {}]   ;;  %s1321_s1 = inlined_call_operand.vmem [shape: bf16[384,128], index: 1, kind: input, shape index: {}]   ;;  %s1322_s2 = inlined_call_operand.vmem [shape: f32[384,1], index: 2, kind: input, shape index: {}]   ;;  %s1323_s3 = inlined_call_operand.vmem [shape: f32[1,128], index: 3, kind: input, shape index: {}]   ;;  %s1324_s4 = inlined_call_operand.vmem [shape: f32[384,128], index: 4, kind: output, shape index: {}]  }
   0x1   :  { %s1154_s17 = smov 0   ;;  %s1156_s18 = smov 0  }
   0x2   :  { %s1158_s19 = smov 0   ;;  %s1160_s20 = smov 0  }
   0x3   :  { %s1162_s21 = smov 0  }
   0x4 LB: > { %s26_s22 = sadd.s32 1, %s1113_s19  ;;  %s33_s23 = sadd.s32 1, %s1117_s20  ;;  %s1121_s21 = sphi %s1162_s21, %s14_s21   ;;  %s1117_s20 = sphi %s1160_s20, %s1330_s20   ;;  %s1113_s19 = sphi %s1158_s19, %s1329_s19   ;;  %s1109_s18 = sphi %s1156_s18, %s1328_s18   ;;  %s1105_s17 = sphi %s1154_s17, %s1327_s17   ;;  %s1101_s16 = sphi %s1152_s16, %s1326_s16   ;;  %s1097_s15 = sphi %s1150_s15, %s1325_s15  }
   0x5   : > { %p27_p0 = scmp.ge.s32.totalorder %s26_s22, 3  ;;  %p49_p1 = scmp.ne.s32.totalorder %s1101_s16, %s1097_s15 }
   0x6   : > { %p50_p2 = scmp.eq.s32.totalorder %s1121_s21, 0  ;;  %s42_s27 = sadd.s32 1, %s1101_s16 }
   0x7   : > { %s1332_s22 = smov (%p27_p0, %s26_s22), 0  ;;  %s1334_s23 = smov (!%p27_p0, %s33_s23), %s1117_s20 }
   0x8   : > { %p51_p3 = por %p50_p2, %p49_p1  ;;  %p35_p4 = scmp.ge.s32.totalorder %s1334_s23, 3 }
   0x9   : > { %s38_s24 = ssub.s32 %s1113_s19, %s1332_s22  ;;  %p908_p6 = scmp.ge.s32.totalorder %s1121_s21, 9 }
   0xa   : > { %s1336_s23 = smov (%p35_p4, %s1334_s23), 0 }
   0xb   : > { %s37_s25 = ssub.s32 %s1117_s20, %s1336_s23  ;;  %189 = sbr.rel (%p908_p6) target bundleno = 27 (0x1b), region = 20 }
   0xc   : > { %s39_s26 = sor.u32 %s38_s24, %s37_s25 }
   0xd   : > { %p40_p5 = scmp.eq.s32.totalorder %s39_s26, 0 }
   0xf   : > { %s1201_s28 = scalar_select %p40_p5, %s1101_s16, %s42_s27  }
  0x12   : > { %192 = sbr.rel (!%p51_p3) target bundleno = 27 (0x1b), region = 24  ;;  %s194_s29 = sand.u32 (%p51_p3), 1, %s1101_s16  }
  0x13   : > { %s998_s30 = smul.u32 (%p51_p3), 12, %s1117_s20  ;;  %s909_s5 = sshll.u32 (%p51_p3), %s194_s29, 5 }
  0x14   : > { %s196_s11 = scalar_lea.vmem (%p51_p3), [#allocation3], %s909_s5 }
  0x15   : > { %s199_s6 = sadd.s32 (%p51_p3), %s1113_s19, %s998_s30 }
  0x16   : > { %s912_s7 = sshll.u32 (%p51_p3), %s199_s6, 3 }
  0x17   : > { %s201_s10 = scalar_lea.vmem (%p51_p3), %s1320_s0, %s912_s7 }
  0x18   : > { %v235_v0 = vld [vmem:[%s201_s10] sm:$0xff] (%p51_p3)  ;;  %v237_v1 = vld [vmem:[%s201_s10 + $0x18] sm:$0xff] (%p51_p3)  ;;  %v239_v2 = vld [vmem:[%s201_s10 + $0x30] sm:$0xff] (%p51_p3) }
  0x19   : > { %236 = vst [vmem:[%s196_s11] sm:$0xff] %v235_v0  ;;  %238 = vst [vmem:[%s196_s11 + $0x8] sm:$0xff] %v237_v1  ;;  %v241_v3 = vld [vmem:[%s201_s10 + $0x48] sm:$0xff] }
  0x1a   : > { %240 = vst [vmem:[%s196_s11 + $0x10] sm:$0xff] %v239_v2  ;;  %242 = vst [vmem:[%s196_s11 + $0x18] sm:$0xff] %v241_v3 }
  0x1b PF: > { %p913_p7 = scmp.ge.s32.totalorder %s1121_s21, 1  ;;  %p268_p8 = scmp.lt.s32.totalorder %s1121_s21, 10 }
  0x1d   : > { %p269_p9 = pnand %p913_p7, %p268_p8 }
  0x1e   : > { %s275_s12 = sand.u32 (!%p269_p9), 1, %s1097_s15   ;;  %s915_s13 = sshll.u32 (!%p269_p9), %s1105_s17, 4 }
  0x1f   : > { %272 = sbr.rel (%p269_p9) target bundleno = 429 (0x1ad), region = 70  ;;  %s914_s14 = sshll.u32 (!%p269_p9), %s275_s12, 5 }
  0x20   : > { %p321_p10 = scmp.lt.s32.totalorder (!%p269_p9), %s915_s13, 47  ;;  %s917_s24 = sshll.u32 (!%p269_p9), %s1109_s18, 4 }
  0x21   : > { %p330_p11 = scmp.lt.s32.totalorder (!%p269_p9), %s917_s24, 47  ;;  %s1230_s18 = scalar_lea.vmem (!%p269_p9), [#allocation3], %s914_s14 }
  0x22   : > { %p921_p12 = scmp.ne.s32.totalorder (!%p269_p9), %s1105_s17, 0 }
  0x26   : > { %s1338_s13 = smov (!%p321_p10, %s915_s13), 47  ;;  %s1340_s24 = smov (!%p330_p11, %s917_s24), 47 }
  0x27   : > { %s916_s25 = sshll.u32 %s1338_s13, 2  ;;  %s918_s30 = sshll.u32 %s1340_s24, 3  ;;  %v1123_v4 = vmov (!%p921_p12), 0.0  }
  0x28   : > { %s1218_s29 = scalar_lea.vmem %s1321_s1, %s916_s25  ;;  %s1223_s7 = scalar_lea.vmem %s1322_s2, %s918_s30  ;;  %352 = vst [vmem:[#allocation2] sm:$0xff] (!%p921_p12), %v1123_v4  ;;  %353 = vst [vmem:[#allocation2 + $0x8] sm:$0xff] (!%p921_p12), %v1123_v4 }
  0x29   : > { %s1228_s9 = scalar_lea.vmem %s1324_s4, %s918_s30  ;;  %351 = sbr.rel (%p921_p12) target bundleno = 48 (0x30), region = 78  ;;  %354 = vst [vmem:[#allocation2 + $0x10] sm:$0xff] (!%p921_p12), %v1123_v4  ;;  %355 = vst [vmem:[#allocation2 + $0x18] sm:$0xff] (!%p921_p12), %v1123_v4 }
  0x2a   : > { %356 = vst [vmem:[#allocation2 + $0x20] sm:$0xff] (!%p921_p12), %v1123_v4  ;;  %357 = vst [vmem:[#allocation2 + $0x28] sm:$0xff] (!%p921_p12), %v1123_v4 }
  0x2b   : > { %358 = vst [vmem:[#allocation2 + $0x30] sm:$0xff] (!%p921_p12), %v1123_v4  ;;  %359 = vst [vmem:[#allocation2 + $0x38] sm:$0xff] (!%p921_p12), %v1123_v4 }
  0x2c   : > { %360 = vst [vmem:[#allocation2 + $0x40] sm:$0xff] (!%p921_p12), %v1123_v4  ;;  %361 = vst [vmem:[#allocation2 + $0x48] sm:$0xff] (!%p921_p12), %v1123_v4 }
  0x2d   : > { %362 = vst [vmem:[#allocation2 + $0x50] sm:$0xff] (!%p921_p12), %v1123_v4  ;;  %363 = vst [vmem:[#allocation2 + $0x58] sm:$0xff] (!%p921_p12), %v1123_v4 }
  0x2e   : > { %364 = vst [vmem:[#allocation2 + $0x60] sm:$0xff] (!%p921_p12), %v1123_v4  ;;  %365 = vst [vmem:[#allocation2 + $0x68] sm:$0xff] (!%p921_p12), %v1123_v4 }
  0x2f   : > { %366 = vst [vmem:[#allocation2 + $0x70] sm:$0xff] (!%p921_p12), %v1123_v4  ;;  %367 = vst [vmem:[#allocation2 + $0x78] sm:$0xff] (!%p921_p12), %v1123_v4 }
  0x30 PF: > { %v1057_v5 = vld [vmem:[%s1218_s29] sm:$0xff]   ;;  %v1058_v6 = vld [vmem:[%s1218_s29 + $0x8] sm:$0xff]   ;;  %v1059_v7 = vld [vmem:[%s1218_s29 + $0x10] sm:$0xff]   ;;  %p930_p13 = scmp.ne.s32.totalorder %s1105_s17, 2 }
  0x31   : > { %950 = vmatprep.subr.bf16.mxu0 %v1057_v5  ;;  %982 = vmatprep.subr.bf16.mxu1 %v1057_v5  ;;  %v1060_v8 = vld [vmem:[%s1218_s29 + $0x18] sm:$0xff]   ;;  %v368_v9 = vld [vmem:[%s1230_s18] sm:$0xff]  ;;  %v370_v10 = vld [vmem:[%s1230_s18 + $0x10] sm:$0xff] }
  0x32   : > { %951 = vmatpush3.bf16.msra.mxu0 %v1057_v5  ;;  %990 = vmatpush3.bf16.msra.mxu1 %v1057_v5  ;;  %v372_v11 = vunpack.c.l.s8.bf16 %v368_v9  ;;  %v376_v12 = vunpack.c.l.s8.bf16 %v370_v10  ;;  %v1061_v13 = vld [vmem:[%s1218_s29 + $0x20] sm:$0xff]   ;;  %v1062_v14 = vld [vmem:[%s1218_s29 + $0x28] sm:$0xff]   ;;  %v1063_v15 = vld [vmem:[%s1218_s29 + $0x30] sm:$0xff]   ;;  %v373_v19 = vunpack.c.h.s8.bf16 %v368_v9  ;;  %v377_v20 = vunpack.c.h.s8.bf16 %v370_v10 }
  0x33   : > { %952 = vmatprep.subr.bf16.mxu0 %v1058_v6  ;;  %983 = vmatprep.subr.bf16.mxu1 %v1058_v6  ;;  %v1064_v16 = vld [vmem:[%s1218_s29 + $0x38] sm:$0xff]   ;;  %v369_v17 = vld [vmem:[%s1230_s18 + $0x8] sm:$0xff]  ;;  %v382_v25 = vld [vmem:[#allocation2 + $0x10] sm:$0xff] }
  0x34   : > { %966 = vmatprep.mubr.bf16.mxu0 %v372_v11  ;;  %974 = vmatprep.mubr.bf16.mxu1 %v376_v12  ;;  %v371_v18 = vld [vmem:[%s1230_s18 + $0x18] sm:$0xff]  ;;  %v374_v21 = vunpack.c.l.s8.bf16 %v369_v17  ;;  %v375_v23 = vunpack.c.h.s8.bf16 %v369_v17  ;;  %v390_v26 = vld [vmem:[#allocation2 + $0x50] sm:$0xff]  ;;  %v380_v27 = vld [vmem:[#allocation2] sm:$0xff]  ;;  %v1124_v11 = vmov (!%p930_p13), 0  }
  0x35   : > { %v378_v22 = vunpack.c.l.s8.bf16 %v371_v18  ;;  %v379_v24 = vunpack.c.h.s8.bf16 %v371_v18  ;;  %v388_v28 = vld [vmem:[#allocation2 + $0x40] sm:$0xff]  ;;  %v383_v31 = vld [vmem:[#allocation2 + $0x18] sm:$0xff]  ;;  %v381_v37 = vld [vmem:[#allocation2 + $0x8] sm:$0xff]  ;;  %1066 = vset.pattern.permute.xlu1 (!%p930_p13), %v1124_v11  ;;  %1065 = vset.pattern.permute.xlu0 (!%p930_p13), %v1124_v11 }
  0x36   : > { %953 = vmatpush3.bf16.msra.mxu0 %v1058_v6  ;;  %991 = vmatpush3.bf16.msra.mxu1 %v1058_v6  ;;  %v391_v32 = vld [vmem:[#allocation2 + $0x58] sm:$0xff]  ;;  %v389_v38 = vld [vmem:[#allocation2 + $0x48] sm:$0xff]  ;;  %v386_v49 = vld [vmem:[#allocation2 + $0x30] sm:$0xff] }
  0x37   : > { %954 = vmatprep.subr.bf16.mxu0 %v1059_v7  ;;  %984 = vmatprep.subr.bf16.mxu1 %v1059_v7  ;;  %v394_v50 = vld [vmem:[#allocation2 + $0x70] sm:$0xff]  ;;  %v384_v51 = vld [vmem:[#allocation2 + $0x20] sm:$0xff]  ;;  %v387_v55 = vld [vmem:[#allocation2 + $0x38] sm:$0xff] }
  0x38   : > { %v392_v52 = vld [vmem:[#allocation2 + $0x60] sm:$0xff]  ;;  %v395_v56 = vld [vmem:[#allocation2 + $0x78] sm:$0xff]  ;;  %v385_v61 = vld [vmem:[#allocation2 + $0x28] sm:$0xff] }
  0x39   : > { %v393_v62 = vld [vmem:[#allocation2 + $0x68] sm:$0xff]  ;;  %v595_v9 = vld [vmem:[%s1223_s7 + $0x10] sm:$0xff] (!%p930_p13)  ;;  %v593_v10 = vld [vmem:[%s1223_s7] sm:$0xff] (!%p930_p13) }
  0x3a   : > { %955 = vmatpush3.bf16.msra.mxu0 %v1059_v7  ;;  %992 = vmatpush3.bf16.msra.mxu1 %v1059_v7  ;;  %v596_v12 = vld [vmem:[%s1223_s7 + $0x18] sm:$0xff] (!%p930_p13)  ;;  %v599_v17 = vld [vmem:[%s1223_s7 + $0x30] sm:$0xff] (!%p930_p13)  ;;  %v602_v18 = vld [vmem:[%s1223_s7 + $0x48] sm:$0xff] (!%p930_p13) }
  0x3b   : > { %956 = vmatprep.subr.bf16.mxu0 %v1060_v8  ;;  %985 = vmatprep.subr.bf16.mxu1 %v1060_v8 }
  0x3c   : > { %637 = vperm.xlu1 (!%p930_p13), %1066, %v595_v9   ;;  %627 = vperm.xlu0 (!%p930_p13), %1065, %v593_v10  }
  0x3e   : > { %957 = vmatpush3.bf16.msra.mxu0 %v1060_v8  ;;  %993 = vmatpush3.bf16.msra.mxu1 %v1060_v8 }
  0x3f   : > { %958 = vmatprep.subr.bf16.mxu0 %v1061_v13  ;;  %986 = vmatprep.subr.bf16.mxu1 %v1061_v13 }
  0x40   : > { %642 = vperm.xlu1 (!%p930_p13), %1066, %v596_v12  }
  0x42   : > { %959 = vmatpush3.bf16.msra.mxu0 %v1061_v13  ;;  %994 = vmatpush3.bf16.msra.mxu1 %v1061_v13  ;;  %v594_v13 = vld [vmem:[%s1223_s7 + $0x8] sm:$0xff] (!%p930_p13) }
  0x43   : > { %960 = vmatprep.subr.bf16.mxu0 %v1062_v14  ;;  %987 = vmatprep.subr.bf16.mxu1 %v1062_v14 }
  0x44   : > { %632 = vperm.xlu0 (!%p930_p13), %1065, %v594_v13  }
  0x46   : > { %961 = vmatpush3.bf16.msra.mxu0 %v1062_v14  ;;  %995 = vmatpush3.bf16.msra.mxu1 %v1062_v14  ;;  %v598_v14 = vld [vmem:[%s1223_s7 + $0x28] sm:$0xff] (!%p930_p13) }
  0x47   : > { %962 = vmatprep.subr.bf16.mxu0 %v1063_v15  ;;  %988 = vmatprep.subr.bf16.mxu1 %v1063_v15 }
  0x48   : > { %652 = vperm.xlu1 (!%p930_p13), %1066, %v598_v14  }
  0x4a   : > { %963 = vmatpush3.bf16.msra.mxu0 %v1063_v15  ;;  %996 = vmatpush3.bf16.msra.mxu1 %v1063_v15  ;;  %v597_v15 = vld [vmem:[%s1223_s7 + $0x20] sm:$0xff] (!%p930_p13) }
  0x4b   : > { %964 = vmatprep.subr.bf16.mxu0 %v1064_v16  ;;  %989 = vmatprep.subr.bf16.mxu1 %v1064_v16 }
  0x4c   : > { %647 = vperm.xlu0 (!%p930_p13), %1065, %v597_v15  }
  0x4e   : > { %965 = vmatpush3.bf16.msra.mxu0 %v1064_v16  ;;  %997 = vmatpush3.bf16.msra.mxu1 %v1064_v16  ;;  %v600_v16 = vld [vmem:[%s1223_s7 + $0x38] sm:$0xff] (!%p930_p13) }
  0x4f   : > { %662 = vperm.xlu1 (!%p930_p13), %1066, %v600_v16  }
  0x50   : > { %657 = vperm.xlu0 (!%p930_p13), %1065, %v599_v17  }
  0x51   : > { %967 = vmatmul.mubr.bf16.vlgmr.msra.gmra.mrb[0].mxu0 %v373_v19  ;;  %975 = vmatmul.mubr.bf16.vlgmr.msra.gmra.mrb[0].mxu1 %v377_v20  ;;  %v601_v19 = vld [vmem:[%s1223_s7 + $0x40] sm:$0xff] (!%p930_p13)  ;;  %v604_v20 = vld [vmem:[%s1223_s7 + $0x58] sm:$0xff] (!%p930_p13) }
  0x52   : > { %970 = vmatprep.mubr.bf16.mxu0 %v374_v21  ;;  %978 = vmatprep.mubr.bf16.mxu1 %v378_v22  ;;  %v603_v21 = vld [vmem:[%s1223_s7 + $0x50] sm:$0xff] (!%p930_p13)  ;;  %v606_v22 = vld [vmem:[%s1223_s7 + $0x68] sm:$0xff] (!%p930_p13) }
  0x53   : > { %672 = vperm.xlu1 (!%p930_p13), %1066, %v602_v18  }
  0x54   : > { %667 = vperm.xlu0 (!%p930_p13), %1065, %v601_v19  }
  0x57   : > { %682 = vperm.xlu1 (!%p930_p13), %1066, %v604_v20  }
  0x58   : > { %677 = vperm.xlu0 (!%p930_p13), %1065, %v603_v21  }
  0x59   : > { %971 = vmatmul.mubr.bf16.gmra.mrb[4].mxu0 %v375_v23  ;;  %979 = vmatmul.mubr.bf16.gmra.mrb[4].mxu1 %v379_v24  ;;  %v605_v23 = vld [vmem:[%s1223_s7 + $0x60] sm:$0xff] (!%p930_p13)  ;;  %v608_v24 = vld [vmem:[%s1223_s7 + $0x78] sm:$0xff] (!%p930_p13) }
  0x5b   : > { %692 = vperm.xlu1 (!%p930_p13), %1066, %v606_v22  }
  0x5c   : > { %687 = vperm.xlu0 (!%p930_p13), %1065, %v605_v23  }
  0x5f   : > { %702 = vperm.xlu1 (!%p930_p13), %1066, %v608_v24  }
 0x124   : > { %v968_v29 = vpop.f32.mrb[0].mxu0  ;;  %v976_v30 = vpop.f32.mrb[0].mxu1 }
 0x125   : > { %v559_v33 = vadd.f32 %v968_v29, %v382_v25  ;;  %v567_v34 = vadd.f32 %v976_v30, %v390_v26  ;;  %v494_v35 = vpop.f32.mrb[1].mxu0  ;;  %v526_v36 = vpop.f32.mrb[1].mxu1  ;;  %v607_v25 = vld [vmem:[%s1223_s7 + $0x70] sm:$0xff] (!%p930_p13) }
 0x126   : > { %v557_v39 = vadd.f32 %v494_v35, %v380_v27  ;;  %v565_v40 = vadd.f32 %v526_v36, %v388_v28  ;;  %v969_v41 = vpop.f32.mrb[2].mxu0  ;;  %v977_v42 = vpop.f32.mrb[2].mxu1  ;;  %697 = vperm.xlu0 (!%p930_p13), %1065, %v607_v25   ;;  %v1265_v28 = vld [vmem:[%s1323_s3] ss:$0 sm:$0xff] (!%p930_p13) }
 0x127   : > { %575 = vst [vmem:[#allocation2 + $0x10] sm:$0xff] %v559_v33  ;;  %583 = vst [vmem:[#allocation2 + $0x50] sm:$0xff] %v567_v34  ;;  %v560_v43 = vadd.f32 %v969_v41, %v383_v31  ;;  %v568_v44 = vadd.f32 %v977_v42, %v391_v32  ;;  %v497_v45 = vpop.f32.mrb[3].mxu0  ;;  %v529_v46 = vpop.f32.mrb[3].mxu1 }
 0x128   : > { %573 = vst [vmem:[#allocation2] sm:$0xff] %v557_v39  ;;  %581 = vst [vmem:[#allocation2 + $0x40] sm:$0xff] %v565_v40  ;;  %v558_v47 = vadd.f32 %v497_v45, %v381_v37  ;;  %v566_v48 = vadd.f32 %v529_v46, %v389_v38  ;;  %v638_v29 = vpop.permute.xlu1 (!%p930_p13), %637  ;;  %v628_v30 = vpop.permute.xlu0 (!%p930_p13), %627 }
 0x129   : > { %576 = vst [vmem:[#allocation2 + $0x18] sm:$0xff] %v560_v43  ;;  %584 = vst [vmem:[#allocation2 + $0x58] sm:$0xff] %v568_v44 }
 0x12a   : > { %574 = vst [vmem:[#allocation2 + $0x8] sm:$0xff] %v558_v47  ;;  %582 = vst [vmem:[#allocation2 + $0x48] sm:$0xff] %v566_v48 }
 0x12c   : > { %v972_v53 = vpop.f32.mrb[4].mxu0  ;;  %v980_v54 = vpop.f32.mrb[4].mxu1  ;;  %592 = sbr.rel (%p930_p13) target bundleno = 429 (0x1ad), region = 82 }
 0x12d   : > { %v563_v57 = vadd.f32 %v972_v53, %v386_v49  ;;  %v571_v58 = vadd.f32 %v980_v54, %v394_v50  ;;  %v510_v59 = vpop.f32.mrb[5].mxu0  ;;  %v542_v60 = vpop.f32.mrb[5].mxu1 }
 0x12e   : > { %v561_v63 = vadd.f32 %v510_v59, %v384_v51  ;;  %v569_v0 = vadd.f32 %v542_v60, %v392_v52  ;;  %v973_v1 = vpop.f32.mrb[6].mxu0  ;;  %v981_v2 = vpop.f32.mrb[6].mxu1  ;;  %v611_v26 = vld [vmem:[#allocation2 + $0x10] sm:$0xff] (!%p930_p13) }
 0x12f   : > { %579 = vst [vmem:[#allocation2 + $0x30] sm:$0xff] %v563_v57  ;;  %587 = vst [vmem:[#allocation2 + $0x70] sm:$0xff] %v571_v58  ;;  %v564_v3 = vadd.f32 %v973_v1, %v387_v55  ;;  %v572_v4 = vadd.f32 %v981_v2, %v395_v56  ;;  %v513_v5 = vpop.f32.mrb[7].mxu0  ;;  %v545_v6 = vpop.f32.mrb[7].mxu1  ;;  %v609_v27 = vld [vmem:[#allocation2] sm:$0xff] (!%p930_p13)  ;;  %v707_v31 = vmul.f32 (!%p930_p13), %v638_v29, %v611_v26  ;;  %v619_v10 = vld [vmem:[#allocation2 + $0x50] sm:$0xff] (!%p930_p13) }
 0x130   : > { %577 = vst [vmem:[#allocation2 + $0x20] sm:$0xff] %v561_v63  ;;  %585 = vst [vmem:[#allocation2 + $0x60] sm:$0xff] %v569_v0  ;;  %v562_v7 = vadd.f32 %v513_v5, %v385_v61  ;;  %v570_v8 = vadd.f32 %v545_v6, %v393_v62  ;;  %v705_v32 = vmul.f32 (!%p930_p13), %v628_v30, %v609_v27  ;;  %v612_v33 = vld [vmem:[#allocation2 + $0x18] sm:$0xff] (!%p930_p13)  ;;  %v643_v37 = vpop.permute.xlu1 (!%p930_p13), %642  ;;  %v633_v38 = vpop.permute.xlu0 (!%p930_p13), %632  ;;  %v617_v0 = vld [vmem:[#allocation2 + $0x40] sm:$0xff] (!%p930_p13) }
 0x131   : > { %580 = vst [vmem:[#allocation2 + $0x38] sm:$0xff] %v564_v3  ;;  %588 = vst [vmem:[#allocation2 + $0x78] sm:$0xff] %v572_v4  ;;  %v610_v34 = vld [vmem:[#allocation2 + $0x8] sm:$0xff] (!%p930_p13)  ;;  %v730_v35 = vadd.f32 (!%p930_p13), %v1265_v28, %v707_v31  ;;  %v708_v41 = vmul.f32 (!%p930_p13), %v643_v37, %v612_v33  ;;  %v620_v9 = vld [vmem:[#allocation2 + $0x58] sm:$0xff] (!%p930_p13) }
 0x132   : > { %578 = vst [vmem:[#allocation2 + $0x28] sm:$0xff] %v562_v7  ;;  %586 = vst [vmem:[#allocation2 + $0x68] sm:$0xff] %v570_v8  ;;  %v728_v36 = vadd.f32 (!%p930_p13), %v1265_v28, %v705_v32  ;;  %v706_v42 = vmul.f32 (!%p930_p13), %v633_v38, %v610_v34  ;;  %v618_v63 = vld [vmem:[#allocation2 + $0x48] sm:$0xff] (!%p930_p13) }
 0x133   : > { %v746_v39 = vmax.f32 %v730_v35, 0.0  ;;  %v731_v45 = vadd.f32 %v1265_v28, %v708_v41 }
 0x134   : > { %v744_v40 = vmax.f32 %v728_v36, 0.0  ;;  %v729_v46 = vadd.f32 %v1265_v28, %v706_v42  ;;  %v653_v47 = vpop.permute.xlu1 %652  ;;  %v648_v48 = vpop.permute.xlu0 %647 }
 0x135   : > { %762 = vst [vmem:[%s1228_s9 + $0x10] sm:$0xff] %v746_v39  ;;  %v747_v49 = vmax.f32 %v731_v45, 0.0 }
 0x136   : > { %760 = vst [vmem:[%s1228_s9] sm:$0xff] %v744_v40  ;;  %v745_v50 = vmax.f32 %v729_v46, 0.0  ;;  %v615_v54 = vld [vmem:[#allocation2 + $0x30] sm:$0xff] }
 0x137   : > { %v613_v44 = vld [vmem:[#allocation2 + $0x20] sm:$0xff]  ;;  %763 = vst [vmem:[%s1228_s9 + $0x18] sm:$0xff] %v747_v49  ;;  %v623_v31 = vld [vmem:[#allocation2 + $0x70] sm:$0xff] }
 0x138   : > { %v709_v52 = vmul.f32 %v648_v48, %v613_v44  ;;  %v616_v53 = vld [vmem:[#allocation2 + $0x38] sm:$0xff]  ;;  %761 = vst [vmem:[%s1228_s9 + $0x8] sm:$0xff] %v745_v50  ;;  %v663_v57 = vpop.permute.xlu1 %662  ;;  %v658_v58 = vpop.permute.xlu0 %657  ;;  %v621_v20 = vld [vmem:[#allocation2 + $0x60] sm:$0xff] }
 0x139   : > { %v614_v43 = vld [vmem:[#allocation2 + $0x28] sm:$0xff]  ;;  %v712_v61 = vmul.f32 %v663_v57, %v616_v53  ;;  %v711_v62 = vmul.f32 %v658_v58, %v615_v54  ;;  %v624_v30 = vld [vmem:[#allocation2 + $0x78] sm:$0xff] }
 0x13a   : > { %v710_v51 = vmul.f32 %v653_v47, %v614_v43  ;;  %v732_v56 = vadd.f32 %v1265_v28, %v709_v52  ;;  %v622_v19 = vld [vmem:[#allocation2 + $0x68] sm:$0xff] }
 0x13b   : > { %v735_v1 = vadd.f32 %v1265_v28, %v712_v61  ;;  %v734_v2 = vadd.f32 %v1265_v28, %v711_v62 }
 0x13c   : > { %v733_v55 = vadd.f32 %v1265_v28, %v710_v51  ;;  %v748_v60 = vmax.f32 %v732_v56, 0.0  ;;  %v673_v3 = vpop.permute.xlu1 %672  ;;  %v668_v4 = vpop.permute.xlu0 %667 }
 0x13d   : > { %v751_v5 = vmax.f32 %v735_v1, 0.0  ;;  %v750_v6 = vmax.f32 %v734_v2, 0.0  ;;  %v714_v7 = vmul.f32 %v673_v3, %v618_v63  ;;  %v713_v8 = vmul.f32 %v668_v4, %v617_v0 }
 0x13e   : > { %v749_v59 = vmax.f32 %v733_v55, 0.0  ;;  %764 = vst [vmem:[%s1228_s9 + $0x20] sm:$0xff] %v748_v60 }
 0x13f   : > { %767 = vst [vmem:[%s1228_s9 + $0x38] sm:$0xff] %v751_v5  ;;  %766 = vst [vmem:[%s1228_s9 + $0x30] sm:$0xff] %v750_v6  ;;  %v737_v11 = vadd.f32 %v1265_v28, %v714_v7  ;;  %v736_v12 = vadd.f32 %v1265_v28, %v713_v8 }
 0x140   : > { %765 = vst [vmem:[%s1228_s9 + $0x28] sm:$0xff] %v749_v59  ;;  %v683_v13 = vpop.permute.xlu1 %682  ;;  %v678_v14 = vpop.permute.xlu0 %677 }
 0x141   : > { %v753_v15 = vmax.f32 %v737_v11, 0.0  ;;  %v752_v16 = vmax.f32 %v736_v12, 0.0  ;;  %v716_v17 = vmul.f32 %v683_v13, %v620_v9  ;;  %v715_v18 = vmul.f32 %v678_v14, %v619_v10 }
 0x143   : > { %769 = vst [vmem:[%s1228_s9 + $0x48] sm:$0xff] %v753_v15  ;;  %768 = vst [vmem:[%s1228_s9 + $0x40] sm:$0xff] %v752_v16  ;;  %v739_v21 = vadd.f32 %v1265_v28, %v716_v17  ;;  %v738_v22 = vadd.f32 %v1265_v28, %v715_v18 }
 0x144   : > { %v693_v23 = vpop.permute.xlu1 %692  ;;  %v688_v24 = vpop.permute.xlu0 %687 }
 0x145   : > { %v755_v25 = vmax.f32 %v739_v21, 0.0  ;;  %v754_v26 = vmax.f32 %v738_v22, 0.0  ;;  %v718_v27 = vmul.f32 %v693_v23, %v622_v19  ;;  %v717_v29 = vmul.f32 %v688_v24, %v621_v20 }
 0x147   : > { %771 = vst [vmem:[%s1228_s9 + $0x58] sm:$0xff] %v755_v25  ;;  %770 = vst [vmem:[%s1228_s9 + $0x50] sm:$0xff] %v754_v26  ;;  %v741_v32 = vadd.f32 %v1265_v28, %v718_v27  ;;  %v740_v33 = vadd.f32 %v1265_v28, %v717_v29 }
 0x148   : > { %v703_v34 = vpop.permute.xlu1 %702 }
 0x149   : > { %v757_v36 = vmax.f32 %v741_v32, 0.0  ;;  %v756_v37 = vmax.f32 %v740_v33, 0.0  ;;  %v720_v38 = vmul.f32 %v703_v34, %v624_v30 }
 0x14b   : > { %773 = vst [vmem:[%s1228_s9 + $0x68] sm:$0xff] %v757_v36  ;;  %772 = vst [vmem:[%s1228_s9 + $0x60] sm:$0xff] %v756_v37  ;;  %v743_v40 = vadd.f32 %v1265_v28, %v720_v38 }
 0x14d   : > { %v759_v42 = vmax.f32 %v743_v40, 0.0 }
 0x14f   : > { %775 = vst [vmem:[%s1228_s9 + $0x78] sm:$0xff] %v759_v42 }
 0x1a5   : > { %v698_v35 = vpop.permute.xlu0 %697 }
 0x1a6   : > { %v719_v39 = vmul.f32 %v698_v35, %v623_v31 }
 0x1a8   : > { %v742_v41 = vadd.f32 %v1265_v28, %v719_v39 }
 0x1aa   : > { %v758_v43 = vmax.f32 %v742_v41, 0.0 }
 0x1ac   : > { %774 = vst [vmem:[%s1228_s9 + $0x70] sm:$0xff] %v758_v43 }
 0x1ad PF: > { %s14_s21 = sadd.s32 1, %s1121_s21   ;;  %s1325_s15 = smov %s1101_s16 }
 0x1ae   : > { %p11_p0 = scmp.ge.s32.totalorder %s14_s21, 11   ;;  %s1326_s16 = smov %s1201_s28 }
 0x1af   : > { %s1327_s17 = smov %s1113_s19  ;;  %s1328_s18 = smov %s1117_s20 }
 0x1b0   : > { %s1329_s19 = smov %s1332_s22  ;;  %s1330_s20 = smov %s1336_s23 }
 0x1b1   :  { %13 = sbr.rel (!%p11_p0) target bundleno = 4 (0x4), region = 126 }

// kernel: vanilla_gcn_feature_embedding.6
= control target key start
LH: loop header
LB: loop body
LE: loop exit
PB: predicated region body
PF: predicated region fallthrough
CT: control target
= control target key end

     0   :  { %s1144_s12 = smov 0   ;;  %s1146_s13 = smov 0   ;;  %s1250_s0 = inlined_call_operand.vmem [shape: bf16[384,128], index: 0, kind: input, shape index: {}]   ;;  %s1251_s1 = inlined_call_operand.vmem [shape: bf16[128,128], index: 1, kind: input, shape index: {}]   ;;  %s1252_s2 = inlined_call_operand.vmem [shape: f32[384,1], index: 2, kind: input, shape index: {}]   ;;  %s1253_s3 = inlined_call_operand.vmem [shape: bf16[384,128], index: 3, kind: output, shape index: {}]  }
   0x1   :  { %s1148_s14 = smov 0  }
   0x2 LB: > { %s32_s15 = sadd.s32 1, %s1117_s13  ;;  %p888_p0 = scmp.ge.s32.totalorder %s1121_s14, 1  ;;  %s1121_s14 = sphi %s1148_s14, %s13_s14   ;;  %s1117_s13 = sphi %s1146_s13, %s1255_s13   ;;  %s1113_s12 = sphi %s1144_s12, %s1254_s12  }
   0x3   : > { %p34_p1 = scmp.ge.s32.totalorder %s32_s15, 3  ;;  %p191_p2 = scmp.lt.s32.totalorder %s1121_s14, 4 }
   0x5   : > { %s1257_s15 = smov (%p34_p1, %s32_s15), 0  ;;  %p192_p3 = pnand %p888_p0, %p191_p2 }
   0x6   : > { %v1083_v0 = vld [vmem:[%s1251_s1] sm:$0xff] (!%p192_p3)   ;;  %s889_s18 = sshll.u32 (!%p192_p3), %s1113_s12, 4  ;;  %v1084_v1 = vld [vmem:[%s1251_s1 + $0x8] sm:$0xff] (!%p192_p3)   ;;  %v1085_v2 = vld [vmem:[%s1251_s1 + $0x10] sm:$0xff] (!%p192_p3)   ;;  %v1123_v3 = vmov (!%p192_p3), 0  }
   0x7   : > { %195 = sbr.rel (%p192_p3) target bundleno = 267 (0x10b), region = 32  ;;  %p235_p4 = scmp.lt.s32.totalorder (!%p192_p3), %s889_s18, 47  ;;  %1008 = vmatprep.subr.bf16.mxu0 (!%p192_p3), %v1083_v0  ;;  %1040 = vmatprep.subr.bf16.mxu1 (!%p192_p3), %v1083_v0  ;;  %v1086_v4 = vld [vmem:[%s1251_s1 + $0x18] sm:$0xff] (!%p192_p3)   ;;  %v1087_v7 = vld [vmem:[%s1251_s1 + $0x20] sm:$0xff] (!%p192_p3)   ;;  %v1088_v8 = vld [vmem:[%s1251_s1 + $0x28] sm:$0xff] (!%p192_p3)  }
   0x8   : > { %1009 = vmatpush3.bf16.msra.mxu0 (!%p192_p3), %v1083_v0  ;;  %1048 = vmatpush3.bf16.msra.mxu1 (!%p192_p3), %v1083_v0  ;;  %v1089_v13 = vld [vmem:[%s1251_s1 + $0x30] sm:$0xff] (!%p192_p3)   ;;  %v1090_v16 = vld [vmem:[%s1251_s1 + $0x38] sm:$0xff] (!%p192_p3)  }
   0x9   : > { %1010 = vmatprep.subr.bf16.mxu0 (!%p192_p3), %v1084_v1  ;;  %1041 = vmatprep.subr.bf16.mxu1 (!%p192_p3), %v1084_v1 }
   0xa   : > { %1082 = vset.pattern.permute.xlu1 (!%p192_p3), %v1123_v3  ;;  %1081 = vset.pattern.permute.xlu0 (!%p192_p3), %v1123_v3 }
   0xc   : > { %1011 = vmatpush3.bf16.msra.mxu0 (!%p192_p3), %v1084_v1  ;;  %1049 = vmatpush3.bf16.msra.mxu1 (!%p192_p3), %v1084_v1 }
   0xd   : > { %1012 = vmatprep.subr.bf16.mxu0 (!%p192_p3), %v1085_v2  ;;  %1042 = vmatprep.subr.bf16.mxu1 (!%p192_p3), %v1085_v2 }
   0xe   : > { %s1259_s18 = smov (!%p235_p4, %s889_s18), 47 }
   0xf   : > { %s890_s23 = sshll.u32 %s1259_s18, 2  ;;  %s892_s29 = sshll.u32 %s1259_s18, 3 }
  0x10   : > { %s1179_s26 = scalar_lea.vmem %s1250_s0, %s890_s23  ;;  %1013 = vmatpush3.bf16.msra.mxu0 %v1085_v2  ;;  %1050 = vmatpush3.bf16.msra.mxu1 %v1085_v2  ;;  %s1193_s7 = scalar_lea.vmem %s1252_s2, %s892_s29 }
  0x11   : > { %v1091_v5 = vld [vmem:[%s1179_s26] sm:$0xff]   ;;  %1014 = vmatprep.subr.bf16.mxu0 %v1086_v4  ;;  %1043 = vmatprep.subr.bf16.mxu1 %v1086_v4  ;;  %v566_v9 = vld [vmem:[%s1193_s7 + $0x10] sm:$0xff]  ;;  %v567_v11 = vld [vmem:[%s1193_s7 + $0x18] sm:$0xff]  ;;  %s1231_s20 = scalar_lea.vmem %s1253_s3, %s890_s23 }
  0x12   : > { %v1092_v6 = vld [vmem:[%s1179_s26 + $0x20] sm:$0xff]   ;;  %1024 = vmatprep.mubr.bf16.mxu0 %v1091_v5  ;;  %608 = vperm.xlu1 %1082, %v566_v9   ;;  %v565_v12 = vld [vmem:[%s1193_s7 + $0x8] sm:$0xff]  ;;  %v571_v17 = vld [vmem:[%s1193_s7 + $0x38] sm:$0xff] }
  0x13   : > { %1032 = vmatprep.mubr.bf16.mxu1 %v1092_v6  ;;  %v564_v10 = vld [vmem:[%s1193_s7] sm:$0xff]  ;;  %v569_v14 = vld [vmem:[%s1193_s7 + $0x28] sm:$0xff]  ;;  %v570_v18 = vld [vmem:[%s1193_s7 + $0x30] sm:$0xff] }
  0x14   : > { %1015 = vmatpush3.bf16.msra.mxu0 %v1086_v4  ;;  %1051 = vmatpush3.bf16.msra.mxu1 %v1086_v4  ;;  %v568_v15 = vld [vmem:[%s1193_s7 + $0x20] sm:$0xff]  ;;  %v1093_v19 = vld [vmem:[%s1179_s26 + $0x8] sm:$0xff]   ;;  %v1095_v23 = vld [vmem:[%s1179_s26 + $0x10] sm:$0xff]  }
  0x15   : > { %1016 = vmatprep.subr.bf16.mxu0 %v1087_v7  ;;  %1044 = vmatprep.subr.bf16.mxu1 %v1087_v7  ;;  %v1094_v20 = vld [vmem:[%s1179_s26 + $0x28] sm:$0xff]   ;;  %v572_v22 = vld [vmem:[%s1193_s7 + $0x40] sm:$0xff]  ;;  %v1096_v24 = vld [vmem:[%s1179_s26 + $0x30] sm:$0xff]  }
  0x16   : > { %598 = vperm.xlu0 %1081, %v564_v10   ;;  %613 = vperm.xlu1 %1082, %v567_v11   ;;  %v573_v21 = vld [vmem:[%s1193_s7 + $0x48] sm:$0xff]  ;;  %v575_v25 = vld [vmem:[%s1193_s7 + $0x58] sm:$0xff]  ;;  %v574_v26 = vld [vmem:[%s1193_s7 + $0x50] sm:$0xff] }
  0x17   : > { %v1097_v27 = vld [vmem:[%s1179_s26 + $0x18] sm:$0xff]   ;;  %v577_v29 = vld [vmem:[%s1193_s7 + $0x68] sm:$0xff]  ;;  %v576_v30 = vld [vmem:[%s1193_s7 + $0x60] sm:$0xff] }
  0x18   : > { %1017 = vmatpush3.bf16.msra.mxu0 %v1087_v7  ;;  %1052 = vmatpush3.bf16.msra.mxu1 %v1087_v7  ;;  %v1098_v28 = vld [vmem:[%s1179_s26 + $0x38] sm:$0xff]   ;;  %v578_v32 = vld [vmem:[%s1193_s7 + $0x70] sm:$0xff] }
  0x19   : > { %1018 = vmatprep.subr.bf16.mxu0 %v1088_v8  ;;  %1045 = vmatprep.subr.bf16.mxu1 %v1088_v8  ;;  %v579_v31 = vld [vmem:[%s1193_s7 + $0x78] sm:$0xff] }
  0x1a   : > { %603 = vperm.xlu0 %1081, %v565_v12   ;;  %623 = vperm.xlu1 %1082, %v569_v14  }
  0x1c   : > { %1019 = vmatpush3.bf16.msra.mxu0 %v1088_v8  ;;  %1053 = vmatpush3.bf16.msra.mxu1 %v1088_v8 }
  0x1d   : > { %1020 = vmatprep.subr.bf16.mxu0 %v1089_v13  ;;  %1046 = vmatprep.subr.bf16.mxu1 %v1089_v13 }
  0x1e   : > { %618 = vperm.xlu0 %1081, %v568_v15   ;;  %633 = vperm.xlu1 %1082, %v571_v17  }
  0x20   : > { %1021 = vmatpush3.bf16.msra.mxu0 %v1089_v13  ;;  %1054 = vmatpush3.bf16.msra.mxu1 %v1089_v13 }
  0x21   : > { %1022 = vmatprep.subr.bf16.mxu0 %v1090_v16  ;;  %1047 = vmatprep.subr.bf16.mxu1 %v1090_v16 }
  0x22   : > { %628 = vperm.xlu0 %1081, %v570_v18   ;;  %643 = vperm.xlu1 %1082, %v573_v21  }
  0x24   : > { %1023 = vmatpush3.bf16.msra.mxu0 %v1090_v16  ;;  %1055 = vmatpush3.bf16.msra.mxu1 %v1090_v16 }
  0x26   : > { %638 = vperm.xlu0 %1081, %v572_v22   ;;  %653 = vperm.xlu1 %1082, %v575_v25  }
  0x27   : > { %1025 = vmatmul.mubr.bf16.vlgmr.msra.gmra.mrb[0].mxu0 %v1093_v19  ;;  %1033 = vmatmul.mubr.bf16.vlgmr.msra.gmra.mrb[0].mxu1 %v1094_v20 }
  0x28   : > { %1028 = vmatprep.mubr.bf16.mxu0 %v1095_v23  ;;  %1036 = vmatprep.mubr.bf16.mxu1 %v1096_v24 }
  0x2a   : > { %648 = vperm.xlu0 %1081, %v574_v26   ;;  %663 = vperm.xlu1 %1082, %v577_v29  }
  0x2e   : > { %658 = vperm.xlu0 %1081, %v576_v30   ;;  %673 = vperm.xlu1 %1082, %v579_v31  }
  0x2f   : > { %1029 = vmatmul.mubr.bf16.gmra.mrb[4].mxu0 %v1097_v27  ;;  %1037 = vmatmul.mubr.bf16.gmra.mrb[4].mxu1 %v1098_v28 }
  0x32   : > { %668 = vperm.xlu0 %1081, %v578_v32  }
  0x91   : > { %v609_v33 = vpop.permute.xlu1 %608 }
  0x95   : > { %v599_v34 = vpop.permute.xlu0 %598  ;;  %v614_v35 = vpop.permute.xlu1 %613 }
  0x99   : > { %v604_v36 = vpop.permute.xlu0 %603  ;;  %v624_v37 = vpop.permute.xlu1 %623 }
  0x9d   : > { %v619_v38 = vpop.permute.xlu0 %618  ;;  %v634_v39 = vpop.permute.xlu1 %633 }
  0xa1   : > { %v629_v40 = vpop.permute.xlu0 %628  ;;  %v644_v41 = vpop.permute.xlu1 %643 }
  0xa5   : > { %v639_v42 = vpop.permute.xlu0 %638  ;;  %v654_v43 = vpop.permute.xlu1 %653 }
  0xa9   : > { %v649_v44 = vpop.permute.xlu0 %648  ;;  %v664_v45 = vpop.permute.xlu1 %663 }
  0xad   : > { %v659_v46 = vpop.permute.xlu0 %658  ;;  %v674_v3 = vpop.permute.xlu1 %673 }
  0xb1   : > { %v669_v4 = vpop.permute.xlu0 %668 }
  0xfa   : > { %v1026_v47 = vpop.f32.mrb[0].mxu0  ;;  %v1034_v48 = vpop.f32.mrb[0].mxu1 }
  0xfb   : > { %v466_v49 = vpop.f32.mrb[1].mxu0  ;;  %v498_v50 = vpop.f32.mrb[1].mxu1  ;;  %v678_v53 = vmul.f32 %v1026_v47, %v609_v33  ;;  %v686_v54 = vmul.f32 %v1034_v48, %v649_v44 }
  0xfc   : > { %v1027_v51 = vpop.f32.mrb[2].mxu0  ;;  %v1035_v52 = vpop.f32.mrb[2].mxu1  ;;  %v676_v59 = vmul.f32 %v599_v34, %v466_v49  ;;  %v684_v60 = vmul.f32 %v639_v42, %v498_v50 }
  0xfd   : > { %v679_v55 = vmul.f32 %v1027_v51, %v614_v35  ;;  %v687_v56 = vmul.f32 %v1035_v52, %v654_v43  ;;  %v469_v57 = vpop.f32.mrb[3].mxu0  ;;  %v501_v58 = vpop.f32.mrb[3].mxu1 }
  0xfe   : > { %v677_v61 = vmul.f32 %v604_v36, %v469_v57  ;;  %v685_v62 = vmul.f32 %v644_v41, %v501_v58 }
  0xff   : > { %v953_v63 = vpack.c.bf16 %v679_v55, %v678_v53  ;;  %v973_v0 = vpack.c.bf16 %v687_v56, %v686_v54 }
 0x100   : > { %v948_v1 = vpack.c.bf16 %v677_v61, %v676_v59  ;;  %v968_v2 = vpack.c.bf16 %v685_v62, %v684_v60 }
 0x101   : > { %985 = vst [vmem:[%s1231_s20 + $0x8] sm:$0xff] %v953_v63   ;;  %989 = vst [vmem:[%s1231_s20 + $0x28] sm:$0xff] %v973_v0  }
 0x102   : > { %949 = vst [vmem:[%s1231_s20] sm:$0xff] %v948_v1   ;;  %988 = vst [vmem:[%s1231_s20 + $0x20] sm:$0xff] %v968_v2   ;;  %v1030_v5 = vpop.f32.mrb[4].mxu0  ;;  %v1038_v6 = vpop.f32.mrb[4].mxu1 }
 0x103   : > { %v482_v7 = vpop.f32.mrb[5].mxu0  ;;  %v514_v8 = vpop.f32.mrb[5].mxu1  ;;  %v682_v11 = vmul.f32 %v1030_v5, %v629_v40  ;;  %v690_v12 = vmul.f32 %v1038_v6, %v669_v4 }
 0x104   : > { %v1031_v9 = vpop.f32.mrb[6].mxu0  ;;  %v1039_v10 = vpop.f32.mrb[6].mxu1  ;;  %v680_v17 = vmul.f32 %v619_v38, %v482_v7  ;;  %v688_v18 = vmul.f32 %v659_v46, %v514_v8 }
 0x105   : > { %v683_v13 = vmul.f32 %v1031_v9, %v634_v39  ;;  %v691_v14 = vmul.f32 %v1039_v10, %v674_v3  ;;  %v485_v15 = vpop.f32.mrb[7].mxu0  ;;  %v517_v16 = vpop.f32.mrb[7].mxu1 }
 0x106   : > { %v681_v19 = vmul.f32 %v624_v37, %v485_v15  ;;  %v689_v20 = vmul.f32 %v664_v45, %v517_v16 }
 0x107   : > { %v963_v21 = vpack.c.bf16 %v683_v13, %v682_v11  ;;  %v983_v22 = vpack.c.bf16 %v691_v14, %v690_v12 }
 0x108   : > { %v958_v23 = vpack.c.bf16 %v681_v19, %v680_v17  ;;  %v978_v24 = vpack.c.bf16 %v689_v20, %v688_v18 }
 0x109   : > { %987 = vst [vmem:[%s1231_s20 + $0x18] sm:$0xff] %v963_v21   ;;  %991 = vst [vmem:[%s1231_s20 + $0x38] sm:$0xff] %v983_v22  }
 0x10a   : > { %986 = vst [vmem:[%s1231_s20 + $0x10] sm:$0xff] %v958_v23   ;;  %990 = vst [vmem:[%s1231_s20 + $0x30] sm:$0xff] %v978_v24  }
 0x10b PF: > { %s13_s14 = sadd.s32 1, %s1121_s14   ;;  %s1254_s12 = smov %s1117_s13 }
 0x10c   : > { %p10_p5 = scmp.ge.s32.totalorder %s13_s14, 5   ;;  %s1255_s13 = smov %s1257_s15 }
 0x10e   :  { %12 = sbr.rel (!%p10_p5) target bundleno = 2 (0x2), region = 76 }

</bundles_post_ra>
